<compile_context>
chip_gen: v5e
topology: v5e:2x2
jax: 0.10.0
libtpu: 0.0.40
codegen_flags: <defaults>
</compile_context>

<pallas_src>
import math

import jax
import jax.numpy as jnp
from jax.experimental import pallas as pl
from jax.experimental.pallas import tpu as pltpu

# Small, shape-consistent config (audio_dim must be divisible by num_heads=8).
AUDIO_DIM = 64
HIDDEN_DIM = 128
NUM_HEADS = 8
HEAD_DIM = AUDIO_DIM // NUM_HEADS
BATCH = 2
SEQ = 8

LANES = 128
PADDED_DIM = ((AUDIO_DIM + LANES - 1) // LANES) * LANES        # 128: lane-dense feature dim
QKV_DIM = 3 * AUDIO_DIM                                        # 192
QKV_PAD = ((QKV_DIM + LANES - 1) // LANES) * LANES             # 256: lane-aligned fused QKV width


def _gelu_exact(x):
    # PyTorch nn.GELU() default = exact (erf-based) GELU.
    return 0.5 * x * (1.0 + jax.lax.erf(x * (1.0 / math.sqrt(2.0))))


def fantasy_audio_kernel(
    x_ref,                # (S, P)        one batch element (padded features)
    w1_ref, b1_ref,       # (P, H), (1, H)
    w2_ref, b2_ref,       # (H, H), (1, H)
    w3_ref, b3_ref,       # (H, P), (1, P)
    wqkv_ref, bqkv_ref,   # (P, 256), (1, 256)   [Q*scale | K | V | 0-pad], K/V biases folded out
    wo_ref, bo_ref,       # (A, P), (1, P)       output proj; V bias folded into bo
    o_ref,                # (S, P)
):
    x = x_ref[...]

    # ---- audio_proj MLP -----------------------------------------------------
    h = _gelu_exact(
        jnp.dot(x, w1_ref[...], preferred_element_type=jnp.float32) + b1_ref[...]
    )
    h = _gelu_exact(
        jnp.dot(h, w2_ref[...], preferred_element_type=jnp.float32) + b2_ref[...]
    )
    proj = jnp.dot(h, w3_ref[...], preferred_element_type=jnp.float32) + b3_ref[...]

    # ---- fused QKV projection: ONE lane-dense matmul ------------------------
    qkv = jnp.dot(proj, wqkv_ref[...], preferred_element_type=jnp.float32) + bqkv_ref[...]

    # ---- multi-head self-attention (q = k = v = proj) ------------------------
    # Heads are lane-packed inside qkv; per-head score/PV matmuls are tiny (8x8x8)
    # and statically unrolled.  Head outputs are lane-concatenated into one slab
    # so the output projection is a single matmul.
    # TODO(synk): for production sizes, block-diagonal K/V packing would fuse the
    # remaining per-head score/PV matmuls into two dense MXU ops.
    A = AUDIO_DIM
    head_outs = []
    for hh in range(NUM_HEADS):
        lo = hh * HEAD_DIM
        q_h = qkv[:, lo:lo + HEAD_DIM]
        k_h = qkv[:, A + lo:A + lo + HEAD_DIM]
        v_h = qkv[:, 2 * A + lo:2 * A + lo + HEAD_DIM]

        s = jnp.einsum("md,nd->mn", q_h, k_h, preferred_element_type=jnp.float32)
        s = s - jnp.max(s, axis=-1, keepdims=True)
        p = jnp.exp(s)
        p = p * pl.reciprocal(jnp.sum(p, axis=-1, keepdims=True), approx=True)

        head_outs.append(jnp.dot(p, v_h, preferred_element_type=jnp.float32))  # (S, DH)

    heads = jnp.concatenate(head_outs, axis=-1)                                 # (S, A)

    # ---- fused output projection (single matmul) + residual ------------------
    attended = jnp.dot(heads, wo_ref[...], preferred_element_type=jnp.float32) + bo_ref[...]
    o_ref[...] = (attended + proj).astype(o_ref.dtype)


def prepare_kernel_params(params):
    """Host-side weight packing.  Call ONCE at load time (hoisted out of the
    per-call jit path): pad the feature dim to 128 lanes, pack [Q*scale | K | V]
    into a single lane-dense (P, 256) matrix, drop the softmax-invariant K bias,
    and fold the V bias into the output-projection bias."""
    w1, b1, w2, b2, w3, b3, in_w, in_b, out_w, out_b = params
    A, P = AUDIO_DIM, PADDED_DIM
    pad_a = P - A
    scale = 1.0 / math.sqrt(HEAD_DIM)

    w1p = jnp.pad(w1, ((0, pad_a), (0, 0)))                      # (P, H)
    b1p = b1.reshape(1, -1)                                      # (1, H)
    b2p = b2.reshape(1, -1)                                      # (1, H)
    w3p = jnp.pad(w3, ((0, 0), (0, pad_a)))                      # (H, P)
    b3p = jnp.pad(b3.reshape(1, -1), ((0, 0), (0, pad_a)))       # (1, P)

    wq, wk, wv = in_w[:, :A], in_w[:, A:2 * A], in_w[:, 2 * A:]
    bq, bk, bv = in_b[:A], in_b[A:2 * A], in_b[2 * A:]
    del bk  # per-row constant in the scores -> softmax-invariant -> dropped

    wqkv = jnp.concatenate([wq * scale, wk, wv], axis=1)                       # (A, 3A)
    wqkv = jnp.pad(wqkv, ((0, pad_a), (0, QKV_PAD - QKV_DIM)))                 # (P, 256)
    bqkv = jnp.concatenate([bq * scale, jnp.zeros((2 * A,), jnp.float32)])
    bqkv = jnp.pad(bqkv.reshape(1, -1), ((0, 0), (0, QKV_PAD - QKV_DIM)))      # (1, 256)

    # V bias: softmax rows sum to 1, so its contribution is (bv @ out_w) per row.
    bo = out_b + bv @ out_w
    wop = jnp.pad(out_w, ((0, 0), (0, pad_a)))                   # (A, P)
    bop = jnp.pad(bo.reshape(1, -1), ((0, 0), (0, pad_a)))       # (1, P)

    return (w1p, b1p, w2, b2p, w3p, b3p, wqkv, bqkv, wop, bop)


@jax.jit
def fantasy_talking_forward(x, kparams):
    """x: (B, S, AUDIO_DIM) float32 -> (B, S, AUDIO_DIM).  kparams = prepare_kernel_params(...)."""
    B, S, A = x.shape
    x_pad = jnp.pad(x, ((0, 0), (0, 0), (0, PADDED_DIM - A)))

    weight_specs = [
        pl.BlockSpec((PADDED_DIM, HIDDEN_DIM), lambda b: (0, 0)),   # w1
        pl.BlockSpec((1, HIDDEN_DIM), lambda b: (0, 0)),            # b1
        pl.BlockSpec((HIDDEN_DIM, HIDDEN_DIM), lambda b: (0, 0)),   # w2
        pl.BlockSpec((1, HIDDEN_DIM), lambda b: (0, 0)),            # b2
        pl.BlockSpec((HIDDEN_DIM, PADDED_DIM), lambda b: (0, 0)),   # w3
        pl.BlockSpec((1, PADDED_DIM), lambda b: (0, 0)),            # b3
        pl.BlockSpec((PADDED_DIM, QKV_PAD), lambda b: (0, 0)),      # wqkv
        pl.BlockSpec((1, QKV_PAD), lambda b: (0, 0)),               # bqkv
        pl.BlockSpec((AUDIO_DIM, PADDED_DIM), lambda b: (0, 0)),    # wo
        pl.BlockSpec((1, PADDED_DIM), lambda b: (0, 0)),            # bo
    ]

    out_pad = pl.pallas_call(
        fantasy_audio_kernel,
        out_shape=jax.ShapeDtypeStruct((B, S, PADDED_DIM), jnp.float32),
        grid_spec=pltpu.PrefetchScalarGridSpec(
            num_scalar_prefetch=0,
            grid=(B,),
            in_specs=[pl.BlockSpec((None, S, PADDED_DIM), lambda b: (b, 0, 0))] + weight_specs,
            out_specs=pl.BlockSpec((None, S, PADDED_DIM), lambda b: (b, 0, 0)),
        ),
        compiler_params=pltpu.CompilerParams(dimension_semantics=("parallel",)),
    )(x_pad, *kparams)

    return out_pad[:, :, :A]


def reference_forward(x, params):
    """Pure-JAX reference of the PyTorch forward (for verification)."""
    w1, b1, w2, b2, w3, b3, in_w, in_b, out_w, out_b = params
    h = jax.nn.gelu(x @ w1 + b1, approximate=False)
    h = jax.nn.gelu(h @ w2 + b2, approximate=False)
    proj = h @ w3 + b3
    qkv = proj @ in_w + in_b
    q, k, v = jnp.split(qkv, 3, axis=-1)

    def heads(t):
        B, S, _ = t.shape
        return t.reshape(B, S, NUM_HEADS, HEAD_DIM).transpose(0, 2, 1, 3)

    qh, kh, vh = heads(q), heads(k), heads(v)
    scores = jnp.einsum("bhqd,bhkd->bhqk", qh, kh) / math.sqrt(HEAD_DIM)
    p = jax.nn.softmax(scores, axis=-1)
    o = jnp.einsum("bhqk,bhkd->bhqd", p, vh)
    o = o.transpose(0, 2, 1, 3).reshape(x.shape[0], x.shape[1], AUDIO_DIM)
    attended = o @ out_w + out_b
    return attended + proj


def init_params(key):
    """Deterministic synthetic weights (shapes from the module's __init__),
    stored pre-transposed as (in, out) for x @ W matmuls."""
    ks = jax.random.split(key, 10)
    s = 0.05
    w1 = s * jax.random.normal(ks[0], (AUDIO_DIM, HIDDEN_DIM), jnp.float32)
    b1 = s * jax.random.normal(ks[1], (HIDDEN_DIM,), jnp.float32)
    w2 = s * jax.random.normal(ks[2], (HIDDEN_DIM, HIDDEN_DIM), jnp.float32)
    b2 = s * jax.random.normal(ks[3], (HIDDEN_DIM,), jnp.float32)
    w3 = s * jax.random.normal(ks[4], (HIDDEN_DIM, AUDIO_DIM), jnp.float32)
    b3 = s * jax.random.normal(ks[5], (AUDIO_DIM,), jnp.float32)
    in_w = s * jax.random.normal(ks[6], (AUDIO_DIM, 3 * AUDIO_DIM), jnp.float32)
    in_b = s * jax.random.normal(ks[7], (3 * AUDIO_DIM,), jnp.float32)
    out_w = s * jax.random.normal(ks[8], (AUDIO_DIM, AUDIO_DIM), jnp.float32)
    out_b = s * jax.random.normal(ks[9], (AUDIO_DIM,), jnp.float32)
    return (w1, b1, w2, b2, w3, b3, in_w, in_b, out_w, out_b)


if __name__ == "__main__":
    key = jax.random.PRNGKey(0)
    k_x, k_p = jax.random.split(key)
    x = jax.random.normal(k_x, (BATCH, SEQ, AUDIO_DIM), jnp.float32)
    params = init_params(k_p)

    # Weight packing runs once here (load time), not inside the per-call jit path.
    kparams = prepare_kernel_params(params)
    kparams = tuple(jax.block_until_ready(p) for p in kparams)

    out = jax.block_until_ready(fantasy_talking_forward(x, kparams))
    ref = reference_forward(x, params)

    assert out.shape == (BATCH, SEQ, AUDIO_DIM)
    max_err = jnp.max(jnp.abs(out - ref))
    # Only deviation from exact f32 math is the EUP approx reciprocal in the
    # softmax denominator (set approx=False in the kernel for <1e-4 agreement).
    assert jnp.allclose(out, ref, rtol=5e-4, atol=5e-4), f"max abs err {max_err}"
    print("KERNEL_OK")
</pallas_src>

<mosaic_0001>
module attributes {stable_mosaic.version = 11 : i64} {
  func.func @fantasy_audio_kernel(%arg0: i32, %arg1: memref<1x8x128xf32, #tpu.memory_space<vmem>>, %arg2: memref<128x128xf32, #tpu.memory_space<vmem>>, %arg3: memref<1x128xf32, #tpu.memory_space<vmem>>, %arg4: memref<128x128xf32, #tpu.memory_space<vmem>>, %arg5: memref<1x128xf32, #tpu.memory_space<vmem>>, %arg6: memref<128x128xf32, #tpu.memory_space<vmem>>, %arg7: memref<1x128xf32, #tpu.memory_space<vmem>>, %arg8: memref<128x256xf32, #tpu.memory_space<vmem>>, %arg9: memref<1x256xf32, #tpu.memory_space<vmem>>, %arg10: memref<64x128xf32, #tpu.memory_space<vmem>>, %arg11: memref<1x128xf32, #tpu.memory_space<vmem>>, %arg12: memref<1x8x128xf32, #tpu.memory_space<vmem>>) attributes {dimension_semantics = [#tpu.dimension_semantics<parallel>], iteration_bounds = array<i64: 2>, scalar_prefetch = 0 : i64, scratch_operands = 0 : i64, tpu.core_type = #tpu.core_type<tc>, window_params = [{transform_indices = @transform_0, window_bounds = array<i64: 1, 8, 128>}, {pipeline_mode = #tpu.pipeline_mode<synchronous>, transform_indices = @transform_1, window_bounds = array<i64: 128, 128>}, {pipeline_mode = #tpu.pipeline_mode<synchronous>, transform_indices = @transform_2, window_bounds = array<i64: 1, 128>}, {pipeline_mode = #tpu.pipeline_mode<synchronous>, transform_indices = @transform_3, window_bounds = array<i64: 128, 128>}, {pipeline_mode = #tpu.pipeline_mode<synchronous>, transform_indices = @transform_4, window_bounds = array<i64: 1, 128>}, {pipeline_mode = #tpu.pipeline_mode<synchronous>, transform_indices = @transform_5, window_bounds = array<i64: 128, 128>}, {pipeline_mode = #tpu.pipeline_mode<synchronous>, transform_indices = @transform_6, window_bounds = array<i64: 1, 128>}, {pipeline_mode = #tpu.pipeline_mode<synchronous>, transform_indices = @transform_7, window_bounds = array<i64: 128, 256>}, {pipeline_mode = #tpu.pipeline_mode<synchronous>, transform_indices = @transform_8, window_bounds = array<i64: 1, 256>}, {pipeline_mode = #tpu.pipeline_mode<synchronous>, transform_indices = @transform_9, window_bounds = array<i64: 64, 128>}, {pipeline_mode = #tpu.pipeline_mode<synchronous>, transform_indices = @transform_10, window_bounds = array<i64: 1, 128>}, {transform_indices = @transform_11, window_bounds = array<i64: 1, 8, 128>}]} {
    %c0 = arith.constant 0 : index
    %c0_0 = arith.constant 0 : index
    %c0_1 = arith.constant 0 : index
    %0 = vector.load %arg1[%c0, %c0_0, %c0_1] : memref<1x8x128xf32, #tpu.memory_space<vmem>>, vector<1x8x128xf32>
    %1 = vector.shape_cast %0 : vector<1x8x128xf32> to vector<8x128xf32>
    %c0_2 = arith.constant 0 : index
    %c0_3 = arith.constant 0 : index
    %2 = vector.load %arg2[%c0_2, %c0_3] : memref<128x128xf32, #tpu.memory_space<vmem>>, vector<128x128xf32>
    %cst = arith.constant dense<0.000000e+00> : vector<8x128xf32>
    %3 = tpu.matmul %1, %2, %cst {dimension_numbers = #tpu.dot_dimension_numbers<[1], [0], [0], [1], [0, 0, 1, 1], [], []>} : vector<8x128xf32>, vector<128x128xf32>, vector<8x128xf32> -> vector<8x128xf32>
    %c0_4 = arith.constant 0 : index
    %c0_5 = arith.constant 0 : index
    %4 = vector.load %arg3[%c0_4, %c0_5] : memref<1x128xf32, #tpu.memory_space<vmem>>, vector<1x128xf32>
    %5 = vector.broadcast %4 : vector<1x128xf32> to vector<8x128xf32>
    %6 = arith.addf %3, %5 : vector<8x128xf32>
    %cst_6 = arith.constant 5.000000e-01 : f32
    %7 = vector.broadcast %cst_6 : f32 to vector<8x128xf32>
    %8 = arith.mulf %7, %6 : vector<8x128xf32>
    %cst_7 = arith.constant 0.707106769 : f32
    %9 = vector.broadcast %cst_7 : f32 to vector<8x128xf32>
    %10 = arith.mulf %6, %9 : vector<8x128xf32>
    %11 = math.erf %10 : vector<8x128xf32>
    %cst_8 = arith.constant 1.000000e+00 : f32
    %12 = vector.broadcast %cst_8 : f32 to vector<8x128xf32>
    %13 = arith.addf %12, %11 : vector<8x128xf32>
    %14 = arith.mulf %8, %13 : vector<8x128xf32>
    %c0_9 = arith.constant 0 : index
    %c0_10 = arith.constant 0 : index
    %15 = vector.load %arg4[%c0_9, %c0_10] : memref<128x128xf32, #tpu.memory_space<vmem>>, vector<128x128xf32>
    %cst_11 = arith.constant dense<0.000000e+00> : vector<8x128xf32>
    %16 = tpu.matmul %14, %15, %cst_11 {dimension_numbers = #tpu.dot_dimension_numbers<[1], [0], [0], [1], [0, 0, 1, 1], [], []>} : vector<8x128xf32>, vector<128x128xf32>, vector<8x128xf32> -> vector<8x128xf32>
    %c0_12 = arith.constant 0 : index
    %c0_13 = arith.constant 0 : index
    %17 = vector.load %arg5[%c0_12, %c0_13] : memref<1x128xf32, #tpu.memory_space<vmem>>, vector<1x128xf32>
    %18 = vector.broadcast %17 : vector<1x128xf32> to vector<8x128xf32>
    %19 = arith.addf %16, %18 : vector<8x128xf32>
    %cst_14 = arith.constant 5.000000e-01 : f32
    %20 = vector.broadcast %cst_14 : f32 to vector<8x128xf32>
    %21 = arith.mulf %20, %19 : vector<8x128xf32>
    %cst_15 = arith.constant 0.707106769 : f32
    %22 = vector.broadcast %cst_15 : f32 to vector<8x128xf32>
    %23 = arith.mulf %19, %22 : vector<8x128xf32>
    %24 = math.erf %23 : vector<8x128xf32>
    %cst_16 = arith.constant 1.000000e+00 : f32
    %25 = vector.broadcast %cst_16 : f32 to vector<8x128xf32>
    %26 = arith.addf %25, %24 : vector<8x128xf32>
    %27 = arith.mulf %21, %26 : vector<8x128xf32>
    %c0_17 = arith.constant 0 : index
    %c0_18 = arith.constant 0 : index
    %28 = vector.load %arg6[%c0_17, %c0_18] : memref<128x128xf32, #tpu.memory_space<vmem>>, vector<128x128xf32>
    %cst_19 = arith.constant dense<0.000000e+00> : vector<8x128xf32>
    %29 = tpu.matmul %27, %28, %cst_19 {dimension_numbers = #tpu.dot_dimension_numbers<[1], [0], [0], [1], [0, 0, 1, 1], [], []>} : vector<8x128xf32>, vector<128x128xf32>, vector<8x128xf32> -> vector<8x128xf32>
    %c0_20 = arith.constant 0 : index
    %c0_21 = arith.constant 0 : index
    %30 = vector.load %arg7[%c0_20, %c0_21] : memref<1x128xf32, #tpu.memory_space<vmem>>, vector<1x128xf32>
    %31 = vector.broadcast %30 : vector<1x128xf32> to vector<8x128xf32>
    %32 = arith.addf %29, %31 : vector<8x128xf32>
    %c0_22 = arith.constant 0 : index
    %c0_23 = arith.constant 0 : index
    %33 = vector.load %arg8[%c0_22, %c0_23] : memref<128x256xf32, #tpu.memory_space<vmem>>, vector<128x256xf32>
    %cst_24 = arith.constant dense<0.000000e+00> : vector<8x256xf32>
    %34 = tpu.matmul %32, %33, %cst_24 {dimension_numbers = #tpu.dot_dimension_numbers<[1], [0], [0], [1], [0, 0, 1, 1], [], []>} : vector<8x128xf32>, vector<128x256xf32>, vector<8x256xf32> -> vector<8x256xf32>
    %c0_25 = arith.constant 0 : index
    %c0_26 = arith.constant 0 : index
    %35 = vector.load %arg9[%c0_25, %c0_26] : memref<1x256xf32, #tpu.memory_space<vmem>>, vector<1x256xf32>
    %36 = vector.broadcast %35 : vector<1x256xf32> to vector<8x256xf32>
    %37 = arith.addf %34, %36 : vector<8x256xf32>
    %38 = vector.extract_strided_slice %37 {offsets = [0, 0], sizes = [8, 8], strides = [1, 1]} : vector<8x256xf32> to vector<8x8xf32>
    %39 = vector.extract_strided_slice %37 {offsets = [0, 64], sizes = [8, 8], strides = [1, 1]} : vector<8x256xf32> to vector<8x8xf32>
    %40 = vector.extract_strided_slice %37 {offsets = [0, 128], sizes = [8, 8], strides = [1, 1]} : vector<8x256xf32> to vector<8x8xf32>
    "tpu.trace_start"() <{level = 10 : i32, message = "md,nd->mn"}> : () -> ()
    %cst_27 = arith.constant dense<0.000000e+00> : vector<8x8xf32>
    %41 = tpu.matmul %38, %39, %cst_27 {dimension_numbers = #tpu.dot_dimension_numbers<[1], [1], [0], [0], [0, 0, 1, 0], [], []>} : vector<8x8xf32>, vector<8x8xf32>, vector<8x8xf32> -> vector<8x8xf32>
    "tpu.trace_stop"() : () -> ()
    %cst_28 = arith.constant dense<0xFF800000> : vector<8xf32>
    %42 = vector.multi_reduction <maximumf>, %41, %cst_28 [1] : vector<8x8xf32> to vector<8xf32>
    %43 = vector.shape_cast %42 : vector<8xf32> to vector<8x1xf32>
    %44 = vector.broadcast %43 : vector<8x1xf32> to vector<8x8xf32>
    %45 = arith.subf %41, %44 : vector<8x8xf32>
    %46 = math.exp %45 : vector<8x8xf32>
    %cst_29 = arith.constant dense<0.000000e+00> : vector<8xf32>
    %47 = vector.multi_reduction <add>, %46, %cst_29 [1] : vector<8x8xf32> to vector<8xf32>
    %48 = vector.shape_cast %47 : vector<8xf32> to vector<8x1xf32>
    %49 = tpu.reciprocal %48 {approx = true} : vector<8x1xf32> -> vector<8x1xf32>
    %50 = vector.broadcast %49 : vector<8x1xf32> to vector<8x8xf32>
    %51 = arith.mulf %46, %50 : vector<8x8xf32>
    %cst_30 = arith.constant dense<0.000000e+00> : vector<8x8xf32>
    %52 = tpu.matmul %51, %40, %cst_30 {dimension_numbers = #tpu.dot_dimension_numbers<[1], [0], [0], [1], [0, 0, 1, 1], [], []>} : vector<8x8xf32>, vector<8x8xf32>, vector<8x8xf32> -> vector<8x8xf32>
    %53 = vector.extract_strided_slice %37 {offsets = [0, 8], sizes = [8, 8], strides = [1, 1]} : vector<8x256xf32> to vector<8x8xf32>
    %54 = vector.extract_strided_slice %37 {offsets = [0, 72], sizes = [8, 8], strides = [1, 1]} : vector<8x256xf32> to vector<8x8xf32>
    %55 = vector.extract_strided_slice %37 {offsets = [0, 136], sizes = [8, 8], strides = [1, 1]} : vector<8x256xf32> to vector<8x8xf32>
    "tpu.trace_start"() <{level = 10 : i32, message = "md,nd->mn"}> : () -> ()
    %cst_31 = arith.constant dense<0.000000e+00> : vector<8x8xf32>
    %56 = tpu.matmul %53, %54, %cst_31 {dimension_numbers = #tpu.dot_dimension_numbers<[1], [1], [0], [0], [0, 0, 1, 0], [], []>} : vector<8x8xf32>, vector<8x8xf32>, vector<8x8xf32> -> vector<8x8xf32>
    "tpu.trace_stop"() : () -> ()
    %cst_32 = arith.constant dense<0xFF800000> : vector<8xf32>
    %57 = vector.multi_reduction <maximumf>, %56, %cst_32 [1] : vector<8x8xf32> to vector<8xf32>
    %58 = vector.shape_cast %57 : vector<8xf32> to vector<8x1xf32>
    %59 = vector.broadcast %58 : vector<8x1xf32> to vector<8x8xf32>
    %60 = arith.subf %56, %59 : vector<8x8xf32>
    %61 = math.exp %60 : vector<8x8xf32>
    %cst_33 = arith.constant dense<0.000000e+00> : vector<8xf32>
    %62 = vector.multi_reduction <add>, %61, %cst_33 [1] : vector<8x8xf32> to vector<8xf32>
    %63 = vector.shape_cast %62 : vector<8xf32> to vector<8x1xf32>
    %64 = tpu.reciprocal %63 {approx = true} : vector<8x1xf32> -> vector<8x1xf32>
    %65 = vector.broadcast %64 : vector<8x1xf32> to vector<8x8xf32>
    %66 = arith.mulf %61, %65 : vector<8x8xf32>
    %cst_34 = arith.constant dense<0.000000e+00> : vector<8x8xf32>
    %67 = tpu.matmul %66, %55, %cst_34 {dimension_numbers = #tpu.dot_dimension_numbers<[1], [0], [0], [1], [0, 0, 1, 1], [], []>} : vector<8x8xf32>, vector<8x8xf32>, vector<8x8xf32> -> vector<8x8xf32>
    %68 = vector.extract_strided_slice %37 {offsets = [0, 16], sizes = [8, 8], strides = [1, 1]} : vector<8x256xf32> to vector<8x8xf32>
    %69 = vector.extract_strided_slice %37 {offsets = [0, 80], sizes = [8, 8], strides = [1, 1]} : vector<8x256xf32> to vector<8x8xf32>
    %70 = vector.extract_strided_slice %37 {offsets = [0, 144], sizes = [8, 8], strides = [1, 1]} : vector<8x256xf32> to vector<8x8xf32>
    "tpu.trace_start"() <{level = 10 : i32, message = "md,nd->mn"}> : () -> ()
    %cst_35 = arith.constant dense<0.000000e+00> : vector<8x8xf32>
    %71 = tpu.matmul %68, %69, %cst_35 {dimension_numbers = #tpu.dot_dimension_numbers<[1], [1], [0], [0], [0, 0, 1, 0], [], []>} : vector<8x8xf32>, vector<8x8xf32>, vector<8x8xf32> -> vector<8x8xf32>
    "tpu.trace_stop"() : () -> ()
    %cst_36 = arith.constant dense<0xFF800000> : vector<8xf32>
    %72 = vector.multi_reduction <maximumf>, %71, %cst_36 [1] : vector<8x8xf32> to vector<8xf32>
    %73 = vector.shape_cast %72 : vector<8xf32> to vector<8x1xf32>
    %74 = vector.broadcast %73 : vector<8x1xf32> to vector<8x8xf32>
    %75 = arith.subf %71, %74 : vector<8x8xf32>
    %76 = math.exp %75 : vector<8x8xf32>
    %cst_37 = arith.constant dense<0.000000e+00> : vector<8xf32>
    %77 = vector.multi_reduction <add>, %76, %cst_37 [1] : vector<8x8xf32> to vector<8xf32>
    %78 = vector.shape_cast %77 : vector<8xf32> to vector<8x1xf32>
    %79 = tpu.reciprocal %78 {approx = true} : vector<8x1xf32> -> vector<8x1xf32>
    %80 = vector.broadcast %79 : vector<8x1xf32> to vector<8x8xf32>
    %81 = arith.mulf %76, %80 : vector<8x8xf32>
    %cst_38 = arith.constant dense<0.000000e+00> : vector<8x8xf32>
    %82 = tpu.matmul %81, %70, %cst_38 {dimension_numbers = #tpu.dot_dimension_numbers<[1], [0], [0], [1], [0, 0, 1, 1], [], []>} : vector<8x8xf32>, vector<8x8xf32>, vector<8x8xf32> -> vector<8x8xf32>
    %83 = vector.extract_strided_slice %37 {offsets = [0, 24], sizes = [8, 8], strides = [1, 1]} : vector<8x256xf32> to vector<8x8xf32>
    %84 = vector.extract_strided_slice %37 {offsets = [0, 88], sizes = [8, 8], strides = [1, 1]} : vector<8x256xf32> to vector<8x8xf32>
    %85 = vector.extract_strided_slice %37 {offsets = [0, 152], sizes = [8, 8], strides = [1, 1]} : vector<8x256xf32> to vector<8x8xf32>
    "tpu.trace_start"() <{level = 10 : i32, message = "md,nd->mn"}> : () -> ()
    %cst_39 = arith.constant dense<0.000000e+00> : vector<8x8xf32>
    %86 = tpu.matmul %83, %84, %cst_39 {dimension_numbers = #tpu.dot_dimension_numbers<[1], [1], [0], [0], [0, 0, 1, 0], [], []>} : vector<8x8xf32>, vector<8x8xf32>, vector<8x8xf32> -> vector<8x8xf32>
    "tpu.trace_stop"() : () -> ()
    %cst_40 = arith.constant dense<0xFF800000> : vector<8xf32>
    %87 = vector.multi_reduction <maximumf>, %86, %cst_40 [1] : vector<8x8xf32> to vector<8xf32>
    %88 = vector.shape_cast %87 : vector<8xf32> to vector<8x1xf32>
    %89 = vector.broadcast %88 : vector<8x1xf32> to vector<8x8xf32>
    %90 = arith.subf %86, %89 : vector<8x8xf32>
    %91 = math.exp %90 : vector<8x8xf32>
    %cst_41 = arith.constant dense<0.000000e+00> : vector<8xf32>
    %92 = vector.multi_reduction <add>, %91, %cst_41 [1] : vector<8x8xf32> to vector<8xf32>
    %93 = vector.shape_cast %92 : vector<8xf32> to vector<8x1xf32>
    %94 = tpu.reciprocal %93 {approx = true} : vector<8x1xf32> -> vector<8x1xf32>
    %95 = vector.broadcast %94 : vector<8x1xf32> to vector<8x8xf32>
    %96 = arith.mulf %91, %95 : vector<8x8xf32>
    %cst_42 = arith.constant dense<0.000000e+00> : vector<8x8xf32>
    %97 = tpu.matmul %96, %85, %cst_42 {dimension_numbers = #tpu.dot_dimension_numbers<[1], [0], [0], [1], [0, 0, 1, 1], [], []>} : vector<8x8xf32>, vector<8x8xf32>, vector<8x8xf32> -> vector<8x8xf32>
    %98 = vector.extract_strided_slice %37 {offsets = [0, 32], sizes = [8, 8], strides = [1, 1]} : vector<8x256xf32> to vector<8x8xf32>
    %99 = vector.extract_strided_slice %37 {offsets = [0, 96], sizes = [8, 8], strides = [1, 1]} : vector<8x256xf32> to vector<8x8xf32>
    %100 = vector.extract_strided_slice %37 {offsets = [0, 160], sizes = [8, 8], strides = [1, 1]} : vector<8x256xf32> to vector<8x8xf32>
    "tpu.trace_start"() <{level = 10 : i32, message = "md,nd->mn"}> : () -> ()
    %cst_43 = arith.constant dense<0.000000e+00> : vector<8x8xf32>
    %101 = tpu.matmul %98, %99, %cst_43 {dimension_numbers = #tpu.dot_dimension_numbers<[1], [1], [0], [0], [0, 0, 1, 0], [], []>} : vector<8x8xf32>, vector<8x8xf32>, vector<8x8xf32> -> vector<8x8xf32>
    "tpu.trace_stop"() : () -> ()
    %cst_44 = arith.constant dense<0xFF800000> : vector<8xf32>
    %102 = vector.multi_reduction <maximumf>, %101, %cst_44 [1] : vector<8x8xf32> to vector<8xf32>
    %103 = vector.shape_cast %102 : vector<8xf32> to vector<8x1xf32>
    %104 = vector.broadcast %103 : vector<8x1xf32> to vector<8x8xf32>
    %105 = arith.subf %101, %104 : vector<8x8xf32>
    %106 = math.exp %105 : vector<8x8xf32>
    %cst_45 = arith.constant dense<0.000000e+00> : vector<8xf32>
    %107 = vector.multi_reduction <add>, %106, %cst_45 [1] : vector<8x8xf32> to vector<8xf32>
    %108 = vector.shape_cast %107 : vector<8xf32> to vector<8x1xf32>
    %109 = tpu.reciprocal %108 {approx = true} : vector<8x1xf32> -> vector<8x1xf32>
    %110 = vector.broadcast %109 : vector<8x1xf32> to vector<8x8xf32>
    %111 = arith.mulf %106, %110 : vector<8x8xf32>
    %cst_46 = arith.constant dense<0.000000e+00> : vector<8x8xf32>
    %112 = tpu.matmul %111, %100, %cst_46 {dimension_numbers = #tpu.dot_dimension_numbers<[1], [0], [0], [1], [0, 0, 1, 1], [], []>} : vector<8x8xf32>, vector<8x8xf32>, vector<8x8xf32> -> vector<8x8xf32>
    %113 = vector.extract_strided_slice %37 {offsets = [0, 40], sizes = [8, 8], strides = [1, 1]} : vector<8x256xf32> to vector<8x8xf32>
    %114 = vector.extract_strided_slice %37 {offsets = [0, 104], sizes = [8, 8], strides = [1, 1]} : vector<8x256xf32> to vector<8x8xf32>
    %115 = vector.extract_strided_slice %37 {offsets = [0, 168], sizes = [8, 8], strides = [1, 1]} : vector<8x256xf32> to vector<8x8xf32>
    "tpu.trace_start"() <{level = 10 : i32, message = "md,nd->mn"}> : () -> ()
    %cst_47 = arith.constant dense<0.000000e+00> : vector<8x8xf32>
    %116 = tpu.matmul %113, %114, %cst_47 {dimension_numbers = #tpu.dot_dimension_numbers<[1], [1], [0], [0], [0, 0, 1, 0], [], []>} : vector<8x8xf32>, vector<8x8xf32>, vector<8x8xf32> -> vector<8x8xf32>
    "tpu.trace_stop"() : () -> ()
    %cst_48 = arith.constant dense<0xFF800000> : vector<8xf32>
    %117 = vector.multi_reduction <maximumf>, %116, %cst_48 [1] : vector<8x8xf32> to vector<8xf32>
    %118 = vector.shape_cast %117 : vector<8xf32> to vector<8x1xf32>
    %119 = vector.broadcast %118 : vector<8x1xf32> to vector<8x8xf32>
    %120 = arith.subf %116, %119 : vector<8x8xf32>
    %121 = math.exp %120 : vector<8x8xf32>
    %cst_49 = arith.constant dense<0.000000e+00> : vector<8xf32>
    %122 = vector.multi_reduction <add>, %121, %cst_49 [1] : vector<8x8xf32> to vector<8xf32>
    %123 = vector.shape_cast %122 : vector<8xf32> to vector<8x1xf32>
    %124 = tpu.reciprocal %123 {approx = true} : vector<8x1xf32> -> vector<8x1xf32>
    %125 = vector.broadcast %124 : vector<8x1xf32> to vector<8x8xf32>
    %126 = arith.mulf %121, %125 : vector<8x8xf32>
    %cst_50 = arith.constant dense<0.000000e+00> : vector<8x8xf32>
    %127 = tpu.matmul %126, %115, %cst_50 {dimension_numbers = #tpu.dot_dimension_numbers<[1], [0], [0], [1], [0, 0, 1, 1], [], []>} : vector<8x8xf32>, vector<8x8xf32>, vector<8x8xf32> -> vector<8x8xf32>
    %128 = vector.extract_strided_slice %37 {offsets = [0, 48], sizes = [8, 8], strides = [1, 1]} : vector<8x256xf32> to vector<8x8xf32>
    %129 = vector.extract_strided_slice %37 {offsets = [0, 112], sizes = [8, 8], strides = [1, 1]} : vector<8x256xf32> to vector<8x8xf32>
    %130 = vector.extract_strided_slice %37 {offsets = [0, 176], sizes = [8, 8], strides = [1, 1]} : vector<8x256xf32> to vector<8x8xf32>
    "tpu.trace_start"() <{level = 10 : i32, message = "md,nd->mn"}> : () -> ()
    %cst_51 = arith.constant dense<0.000000e+00> : vector<8x8xf32>
    %131 = tpu.matmul %128, %129, %cst_51 {dimension_numbers = #tpu.dot_dimension_numbers<[1], [1], [0], [0], [0, 0, 1, 0], [], []>} : vector<8x8xf32>, vector<8x8xf32>, vector<8x8xf32> -> vector<8x8xf32>
    "tpu.trace_stop"() : () -> ()
    %cst_52 = arith.constant dense<0xFF800000> : vector<8xf32>
    %132 = vector.multi_reduction <maximumf>, %131, %cst_52 [1] : vector<8x8xf32> to vector<8xf32>
    %133 = vector.shape_cast %132 : vector<8xf32> to vector<8x1xf32>
    %134 = vector.broadcast %133 : vector<8x1xf32> to vector<8x8xf32>
    %135 = arith.subf %131, %134 : vector<8x8xf32>
    %136 = math.exp %135 : vector<8x8xf32>
    %cst_53 = arith.constant dense<0.000000e+00> : vector<8xf32>
    %137 = vector.multi_reduction <add>, %136, %cst_53 [1] : vector<8x8xf32> to vector<8xf32>
    %138 = vector.shape_cast %137 : vector<8xf32> to vector<8x1xf32>
    %139 = tpu.reciprocal %138 {approx = true} : vector<8x1xf32> -> vector<8x1xf32>
    %140 = vector.broadcast %139 : vector<8x1xf32> to vector<8x8xf32>
    %141 = arith.mulf %136, %140 : vector<8x8xf32>
    %cst_54 = arith.constant dense<0.000000e+00> : vector<8x8xf32>
    %142 = tpu.matmul %141, %130, %cst_54 {dimension_numbers = #tpu.dot_dimension_numbers<[1], [0], [0], [1], [0, 0, 1, 1], [], []>} : vector<8x8xf32>, vector<8x8xf32>, vector<8x8xf32> -> vector<8x8xf32>
    %143 = vector.extract_strided_slice %37 {offsets = [0, 56], sizes = [8, 8], strides = [1, 1]} : vector<8x256xf32> to vector<8x8xf32>
    %144 = vector.extract_strided_slice %37 {offsets = [0, 120], sizes = [8, 8], strides = [1, 1]} : vector<8x256xf32> to vector<8x8xf32>
    %145 = vector.extract_strided_slice %37 {offsets = [0, 184], sizes = [8, 8], strides = [1, 1]} : vector<8x256xf32> to vector<8x8xf32>
    "tpu.trace_start"() <{level = 10 : i32, message = "md,nd->mn"}> : () -> ()
    %cst_55 = arith.constant dense<0.000000e+00> : vector<8x8xf32>
    %146 = tpu.matmul %143, %144, %cst_55 {dimension_numbers = #tpu.dot_dimension_numbers<[1], [1], [0], [0], [0, 0, 1, 0], [], []>} : vector<8x8xf32>, vector<8x8xf32>, vector<8x8xf32> -> vector<8x8xf32>
    "tpu.trace_stop"() : () -> ()
    %cst_56 = arith.constant dense<0xFF800000> : vector<8xf32>
    %147 = vector.multi_reduction <maximumf>, %146, %cst_56 [1] : vector<8x8xf32> to vector<8xf32>
    %148 = vector.shape_cast %147 : vector<8xf32> to vector<8x1xf32>
    %149 = vector.broadcast %148 : vector<8x1xf32> to vector<8x8xf32>
    %150 = arith.subf %146, %149 : vector<8x8xf32>
    %151 = math.exp %150 : vector<8x8xf32>
    %cst_57 = arith.constant dense<0.000000e+00> : vector<8xf32>
    %152 = vector.multi_reduction <add>, %151, %cst_57 [1] : vector<8x8xf32> to vector<8xf32>
    %153 = vector.shape_cast %152 : vector<8xf32> to vector<8x1xf32>
    %154 = tpu.reciprocal %153 {approx = true} : vector<8x1xf32> -> vector<8x1xf32>
    %155 = vector.broadcast %154 : vector<8x1xf32> to vector<8x8xf32>
    %156 = arith.mulf %151, %155 : vector<8x8xf32>
    %cst_58 = arith.constant dense<0.000000e+00> : vector<8x8xf32>
    %157 = tpu.matmul %156, %145, %cst_58 {dimension_numbers = #tpu.dot_dimension_numbers<[1], [0], [0], [1], [0, 0, 1, 1], [], []>} : vector<8x8xf32>, vector<8x8xf32>, vector<8x8xf32> -> vector<8x8xf32>
    %158 = tpu.concatenate %52, %67, %82, %97, %112, %127, %142, %157 in 1 : vector<8x8xf32>, vector<8x8xf32>, vector<8x8xf32>, vector<8x8xf32>, vector<8x8xf32>, vector<8x8xf32>, vector<8x8xf32>, vector<8x8xf32> -> vector<8x64xf32>
    %c0_59 = arith.constant 0 : index
    %c0_60 = arith.constant 0 : index
    %159 = vector.load %arg10[%c0_59, %c0_60] : memref<64x128xf32, #tpu.memory_space<vmem>>, vector<64x128xf32>
    %cst_61 = arith.constant dense<0.000000e+00> : vector<8x128xf32>
    %160 = tpu.matmul %158, %159, %cst_61 {dimension_numbers = #tpu.dot_dimension_numbers<[1], [0], [0], [1], [0, 0, 1, 1], [], []>} : vector<8x64xf32>, vector<64x128xf32>, vector<8x128xf32> -> vector<8x128xf32>
    %c0_62 = arith.constant 0 : index
    %c0_63 = arith.constant 0 : index
    %161 = vector.load %arg11[%c0_62, %c0_63] : memref<1x128xf32, #tpu.memory_space<vmem>>, vector<1x128xf32>
    %162 = vector.broadcast %161 : vector<1x128xf32> to vector<8x128xf32>
    %163 = arith.addf %160, %162 : vector<8x128xf32>
    %164 = arith.addf %163, %32 : vector<8x128xf32>
    %c0_64 = arith.constant 0 : index
    %c0_65 = arith.constant 0 : index
    %c0_66 = arith.constant 0 : index
    %165 = vector.load %arg12[%c0_64, %c0_65, %c0_66] : memref<1x8x128xf32, #tpu.memory_space<vmem>>, vector<1x8x128xf32>
    %166 = vector.shape_cast %165 : vector<1x8x128xf32> to vector<8x128xf32>
    %167 = vector.shape_cast %164 : vector<8x128xf32> to vector<1x8x128xf32>
    tpu.vector_store %arg12[%c0_64, %c0_65, %c0_66], %167 {strides = array<i32>} : memref<1x8x128xf32, #tpu.memory_space<vmem>>, vector<1x8x128xf32>,
    return
  }
  func.func @transform_0(%arg0: i32) -> (i32, i32, i32) {
    %c0_i32 = arith.constant 0 : i32
    %c0_i32_0 = arith.constant 0 : i32
    %c0_i32_1 = arith.constant 0 : i32
    return %arg0, %c0_i32, %c0_i32_0 : i32, i32, i32
  }
  func.func @transform_1(%arg0: i32) -> (i32, i32) {
    %c0_i32 = arith.constant 0 : i32
    %c0_i32_0 = arith.constant 0 : i32
    %c0_i32_1 = arith.constant 0 : i32
    return %c0_i32, %c0_i32_0 : i32, i32
  }
  func.func @transform_2(%arg0: i32) -> (i32, i32) {
    %c0_i32 = arith.constant 0 : i32
    %c0_i32_0 = arith.constant 0 : i32
    %c0_i32_1 = arith.constant 0 : i32
    return %c0_i32, %c0_i32_0 : i32, i32
  }
  func.func @transform_3(%arg0: i32) -> (i32, i32) {
    %c0_i32 = arith.constant 0 : i32
    %c0_i32_0 = arith.constant 0 : i32
    %c0_i32_1 = arith.constant 0 : i32
    return %c0_i32, %c0_i32_0 : i32, i32
  }
  func.func @transform_4(%arg0: i32) -> (i32, i32) {
    %c0_i32 = arith.constant 0 : i32
    %c0_i32_0 = arith.constant 0 : i32
    %c0_i32_1 = arith.constant 0 : i32
    return %c0_i32, %c0_i32_0 : i32, i32
  }
  func.func @transform_5(%arg0: i32) -> (i32, i32) {
    %c0_i32 = arith.constant 0 : i32
    %c0_i32_0 = arith.constant 0 : i32
    %c0_i32_1 = arith.constant 0 : i32
    return %c0_i32, %c0_i32_0 : i32, i32
  }
  func.func @transform_6(%arg0: i32) -> (i32, i32) {
    %c0_i32 = arith.constant 0 : i32
    %c0_i32_0 = arith.constant 0 : i32
    %c0_i32_1 = arith.constant 0 : i32
    return %c0_i32, %c0_i32_0 : i32, i32
  }
  func.func @transform_7(%arg0: i32) -> (i32, i32) {
    %c0_i32 = arith.constant 0 : i32
    %c0_i32_0 = arith.constant 0 : i32
    %c0_i32_1 = arith.constant 0 : i32
    return %c0_i32, %c0_i32_0 : i32, i32
  }
  func.func @transform_8(%arg0: i32) -> (i32, i32) {
    %c0_i32 = arith.constant 0 : i32
    %c0_i32_0 = arith.constant 0 : i32
    %c0_i32_1 = arith.constant 0 : i32
    return %c0_i32, %c0_i32_0 : i32, i32
  }
  func.func @transform_9(%arg0: i32) -> (i32, i32) {
    %c0_i32 = arith.constant 0 : i32
    %c0_i32_0 = arith.constant 0 : i32
    %c0_i32_1 = arith.constant 0 : i32
    return %c0_i32, %c0_i32_0 : i32, i32
  }
  func.func @transform_10(%arg0: i32) -> (i32, i32) {
    %c0_i32 = arith.constant 0 : i32
    %c0_i32_0 = arith.constant 0 : i32
    %c0_i32_1 = arith.constant 0 : i32
    return %c0_i32, %c0_i32_0 : i32, i32
  }
  func.func @transform_11(%arg0: i32) -> (i32, i32, i32) {
    %c0_i32 = arith.constant 0 : i32
    %c0_i32_0 = arith.constant 0 : i32
    %c0_i32_1 = arith.constant 0 : i32
    return %arg0, %c0_i32, %c0_i32_0 : i32, i32, i32
  }
}

</mosaic_0001>

<bundles_post_ra>
// kernel: fantasy_talking_forward.1
= control target key start
LH: loop header
LB: loop body
LE: loop exit
PB: predicated region body
PF: predicated region fallthrough
CT: control target
= control target key end

     0   :  { %s2264_s0 = inlined_call_operand.vmem [shape: f32[2,8,128], index: 0, kind: input, shape index: {}]   ;;  %s2265_s1 = inlined_call_operand.hbm [shape: f32[128,128], index: 1, kind: input, shape index: {}]   ;;  %s2266_s2 = inlined_call_operand.vmem [shape: f32[1,128], index: 2, kind: input, shape index: {}]   ;;  %s2267_s3 = inlined_call_operand.hbm [shape: f32[128,128], index: 3, kind: input, shape index: {}]   ;;  %s2268_s4 = inlined_call_operand.vmem [shape: f32[1,128], index: 4, kind: input, shape index: {}]   ;;  %s2269_s5 = inlined_call_operand.hbm [shape: f32[128,128], index: 5, kind: input, shape index: {}]   ;;  %s2270_s6 = inlined_call_operand.vmem [shape: f32[1,128], index: 6, kind: input, shape index: {}]   ;;  %s2271_s7 = inlined_call_operand.hbm [shape: f32[128,256], index: 7, kind: input, shape index: {}]   ;;  %s2272_s8 = inlined_call_operand.vmem [shape: f32[1,256], index: 8, kind: input, shape index: {}]   ;;  %s2273_s9 = inlined_call_operand.hbm [shape: f32[64,128], index: 9, kind: input, shape index: {}]   ;;  %s2274_s10 = inlined_call_operand.vmem [shape: f32[1,128], index: 10, kind: input, shape index: {}]   ;;  %s2275_s11 = inlined_call_operand.hbm [shape: f32[2,8,128], index: 11, kind: output, shape index: {}]  }
   0x1   :  { %2284 = sst [smem:[#allocation23_spill]] %s2267_s3 }
   0x2   :  { %2285 = sst [smem:[#allocation24_spill]] %s2271_s7 }
   0x3   :  { %16 = vsyncpa [#allocation3], 0 }
   0x4   :  { %17 = vsyncpa [#allocation6], 0 }
   0x5   :  { %18 = vsyncpa [#allocation9], 0 }
   0x6   :  { %19 = vsyncpa [#allocation4], 0 }
   0x7   :  { %21 = vsyncpa [#allocation4 + $0x1], 0  ;;  %s1980_s17 = smov 0   ;;  %s1982_s18 = smov 0  }
   0x8   :  { %s1984_s19 = smov 0   ;;  %s1986_s20 = smov 0  }
   0x9 LB: > { %2286 = sst [smem:[#allocation16_spill]] %s1882_s17  ;;  %s2001_s21 = sadd.s32 4294967295, %s1894_s20   ;;  %s1894_s20 = sphi %s1986_s20, %s2303_s20   ;;  %s1890_s19 = sphi %s1984_s19, %s2305_s19   ;;  %s1886_s18 = sphi %s1982_s18, %s2307_s18   ;;  %s1882_s17 = sphi %s1980_s17, %s2306_s17  }
   0xa   : > { %2287 = sst [smem:[#allocation17_spill]] %s1890_s19  ;;  %s1474_s22 = sadd.s32 4294967294, %s1894_s20  }
   0xb   : > { %2288 = sst [smem:[#allocation18_spill]] %s1894_s20  ;;  %s2005_s23 = sadd.s32 1, %s1894_s20  }
   0xc   : > { %2289 = sst [smem:[#allocation19_spill]] %s2005_s23  ;;  %s270_s24 = sadd.s32 1, %s1890_s19 }
   0xd   : > { %s267_s25 = ssub.s32 %s1894_s20, %s2005_s23  ;;  %p280_p0 = scmp.ne.s32.totalorder %s1890_s19, %s1886_s18 }
   0xe   : > { %p268_p1 = scmp.eq.s32.totalorder %s267_s25, 0  ;;  %p281_p2 = scmp.eq.s32.totalorder %s2001_s21, 1 }
   0xf   : > { %p286_p3 = scmp.ne.s32.totalorder %s1886_s18, %s1882_s17  ;;  %p287_p4 = scmp.eq.s32.totalorder %s1474_s22, 1 }
  0x10   : > { %s2016_s26 = scalar_select %p268_p1, %s1890_s19, %s270_s24  }
  0x11   : > { %p2018_p5 = por %p281_p2, %p280_p0  ;;  %p2022_p6 = por %p287_p4, %p286_p3 }
  0x12   : > { %2290 = sst [smem:[#allocation20_spill]] %s2016_s26  ;;  %p1475_p7 = scmp.ge.s32.totalorder %s1894_s20, 1 }
  0x13   : > { %s2291_s27 = scalar_select %p2018_p5, 1, 0 }
  0x14   : > { %s2293_s28 = scalar_select %p2022_p6, 1, 0 }
  0x15   : > { %2292 = sst [smem:[#allocation21_spill]] %s2291_s27  ;;  %p294_p8 = scmp.lt.s32.totalorder %s1894_s20, 3 }
  0x16   : > { %2294 = sst [smem:[#allocation22_spill]] %s2293_s28  ;;  %p1563_p9 = scmp.eq.s32.totalorder %s2001_s21, 0 }
  0x17   : > { %p2029_p10 = pnand %p1475_p7, %p294_p8  ;;  %s2296_s3 = sld [smem:[#allocation23_spill]] }
  0x18   : > { %s2297_s7 = sld [smem:[#allocation24_spill]]  ;;  %s1896_s24 = smov [#allocation5]  }
  0x19   : > { %p1543_p11 = pneg %p2029_p10  ;;  %s324_s25 = sshll.u32 %s1896_s24, 4  ;;  %s325_s25 = int_to_ptr.vmem [resolvable:$true] %s324_s25 }
  0x1a   : > { %s1897_s30 = smov 128   ;;  %s1898_s12 = smov 8  }
  0x1b   : > { %p2043_p12 = pnand %p1563_p9, %p1543_p11  ;;  %s1900_s14 = smov 256  }
  0x1c   : > { %s1901_s15 = smov 16   ;;  %s305_s23 = sshll.u32 %s2265_s1, 4  ;;  %s306_s23 = int_to_ptr.hbm [resolvable:$true] %s305_s23 }
  0x1d   : > { %s322_s13 = sshll.u32 %s2296_s3, 4  ;;  %s1899_s3 = smov [#allocation8]   ;;  %s323_s13 = int_to_ptr.hbm [resolvable:$true] %s322_s13 }
  0x1e   : > { %s356_s16 = sshll.u32 %s2297_s7, 4  ;;  %s358_s26 = sshll.u32 %s1899_s3, 4  ;;  %s357_s16 = int_to_ptr.hbm [resolvable:$true] %s356_s16  ;;  %s359_s26 = int_to_ptr.vmem [resolvable:$true] %s358_s26 }
  0x1f   : > { %1549 = dma.hbm_to_vmem [thread:$0]  (!%p2043_p12), %s323_s13, 2048, %s325_s25, [#allocation6], %s1897_s30, %s1897_s30, %s1898_s12  }
  0x20   : > { %1555 = dma.hbm_to_vmem [thread:$0]  (!%p2043_p12), %s357_s16, 4096, %s359_s26, [#allocation9], %s1900_s14, %s1900_s14, %s1901_s15  }
  0x21   : > { %s1902_s24 = smov [#allocation2]   ;;  %s339_s13 = sshll.u32 %s2269_s5, 4  ;;  %s340_s13 = int_to_ptr.hbm [resolvable:$true] %s339_s13 }
  0x22   : > { %s307_s28 = sshll.u32 %s1902_s24, 4  ;;  %s1903_s3 = smov [#allocation7]   ;;  %s308_s28 = int_to_ptr.vmem [resolvable:$true] %s307_s28 }
  0x23   : > { %1546 = dma.hbm_to_vmem [thread:$0]  (!%p2043_p12), %s306_s23, 2048, %s308_s28, [#allocation3], %s1897_s30, %s1897_s30, %s1898_s12  }
  0x24   : > { %s341_s25 = sshll.u32 %s1903_s3, 4  ;;  %s373_s16 = sshll.u32 %s2273_s9, 4  ;;  %s342_s25 = int_to_ptr.vmem [resolvable:$true] %s341_s25  ;;  %s374_s16 = int_to_ptr.hbm [resolvable:$true] %s373_s16 }
  0x25   : > { %1552 = dma.hbm_to_vmem [thread:$0]  (!%p2043_p12), %s340_s13, 2048, %s342_s25, [#allocation6], %s1897_s30, %s1897_s30, %s1898_s12  }
  0x26   : > { %s1904_s7 = smov [#allocation10]   ;;  %401 = sbr.rel (%p2029_p10) target bundleno = 2798 (0xaee), region = 64 }
  0x27   : > { %s375_s19 = sshll.u32 %s1904_s7, 4  ;;  %s376_s19 = int_to_ptr.vmem [resolvable:$true] %s375_s19 }
  0x28   : > { %1558 = dma.hbm_to_vmem [thread:$0]  (!%p2043_p12), %s374_s16, 1024, %s376_s19, [#allocation9], %s1897_s30, %s1897_s30, %s1898_s12  }
  0x2b   : > { %1865 = dma.done.wait (%p1563_p9), [#allocation3], 2048  }
  0x2c   : > { %1867 = vsyncadd (%p1563_p9), [#allocation3], 4294965248 }
  0x2d   : > { %1869 = dma.done.wait (%p1563_p9), [#allocation6], 4096  }
  0x2e   : > { %1871 = vsyncadd (%p1563_p9), [#allocation6], 4294963200 }
  0x2f   : > { %1873 = dma.done.wait (%p1563_p9), [#allocation9], 5120  }
  0x30   : > { %1875 = vsyncadd (%p1563_p9), [#allocation9], 4294962176  ;;  %v481_v0 = vld [vmem:[#allocation2 + $0x78] sm:$0xff]  ;;  %v480_v1 = vld [vmem:[#allocation2 + $0x70] sm:$0xff]  ;;  %p461_p13 = scmp.lt.s32.totalorder %s2001_s21, 1  ;;  %s1905_s3 = smov 120  }
  0x31   : > { %486 = vmatpush.msra.mxu0 %v481_v0  ;;  %v479_v2 = vld [vmem:[#allocation2 + $0x68] sm:$0xff]  ;;  %v478_v3 = vld [vmem:[#allocation2 + $0x60] sm:$0xff]  ;;  %v477_v4 = vld [vmem:[#allocation2 + $0x58] sm:$0xff]  ;;  %s1906_s25 = smov 64   ;;  %s1907_s26 = smov 48   ;;  %vm755_vm8 = vcmask 64512  }
  0x32   : > { %v476_v5 = vld [vmem:[#allocation2 + $0x50] sm:$0xff]  ;;  %v475_v6 = vld [vmem:[#allocation2 + $0x48] sm:$0xff]  ;;  %v474_v7 = vld [vmem:[#allocation2 + $0x40] sm:$0xff]  ;;  %s462_s17 = scalar_select %p461_p13, %s2001_s21, 1  ;;  %vm1299_vm9 = vcmask 130048   ;;  %vm1301_vm10 = vcmask 195584  }
  0x33   : > { %487 = vmatpush.msra.mxu0 %v480_v1  ;;  %v473_v8 = vld [vmem:[#allocation2 + $0x38] sm:$0xff]  ;;  %v472_v9 = vld [vmem:[#allocation2 + $0x30] sm:$0xff]  ;;  %v471_v10 = vld [vmem:[#allocation2 + $0x28] sm:$0xff]  ;;  %s1908_s16 = smov 112   ;;  %s1909_s7 = smov 56   ;;  %vm1303_vm11 = vcmask 261120  }
  0x34   : > { %v470_v11 = vld [vmem:[#allocation2 + $0x20] sm:$0xff]  ;;  %v469_v12 = vld [vmem:[#allocation2 + $0x18] sm:$0xff]  ;;  %s1489_s20 = sshll.u32 %s462_s17, 3  ;;  %v468_v13 = vld [vmem:[#allocation2 + $0x10] sm:$0xff]  ;;  %s1910_s19 = smov 104   ;;  %vm1305_vm12 = vcmask 326656  }
  0x35   : > { %488 = vmatpush.msra.mxu0 %v479_v2  ;;  %v467_v14 = vld [vmem:[#allocation2 + $0x8] sm:$0xff]  ;;  %s464_s28 = scalar_lea.vmem %s2264_s0, %s1489_s20  ;;  %v466_v15 = vld [vmem:[#allocation2] sm:$0xff]  ;;  %v565_v17 = vld [vmem:[#allocation5 + $0x78] sm:$0xff]  ;;  %s1911_s17 = smov 40   ;;  %vm1307_vm13 = vcmask 392192   ;;  %vm1309_vm14 = vcmask 457728  }
  0x36   : > { %v465_v16 = vld [vmem:[%s464_s28] sm:$0xff]  ;;  %570 = vmatpush.msra.mxu1 %v565_v17  ;;  %v564_v18 = vld [vmem:[#allocation5 + $0x70] sm:$0xff]  ;;  %v563_v19 = vld [vmem:[#allocation5 + $0x68] sm:$0xff]  ;;  %s1912_s20 = smov 32   ;;  %s1913_s23 = smov 96   ;;  %vm1323_vm15 = vcmask 523264  }
  0x37   : > { %489 = vmatpush.msra.mxu0 %v478_v3  ;;  %v562_v20 = vld [vmem:[#allocation5 + $0x60] sm:$0xff]  ;;  %v561_v22 = vld [vmem:[#allocation5 + $0x58] sm:$0xff]  ;;  %v560_v23 = vld [vmem:[#allocation5 + $0x50] sm:$0xff]  ;;  %s1914_s27 = smov 24   ;;  %s1915_s28 = smov 72  }
  0x38   : > { %571 = vmatpush.msra.mxu1 %v564_v18  ;;  %v1630_v21 = vld [vmem:[%s2266_s2] ss:$0 sm:$0xff]  ;;  %v559_v25 = vld [vmem:[#allocation5 + $0x48] sm:$0xff]  ;;  %v557_v29 = vld [vmem:[#allocation5 + $0x38] sm:$0xff]  ;;  %s1916_s29 = smov 16   ;;  %s1917_s22 = smov 88  }
  0x39   : > { %490 = vmatpush.msra.mxu0 %v477_v4  ;;  %v558_v27 = vld [vmem:[#allocation5 + $0x40] sm:$0xff]  ;;  %v556_v31 = vld [vmem:[#allocation5 + $0x30] sm:$0xff]  ;;  %v555_v33 = vld [vmem:[#allocation5 + $0x28] sm:$0xff]  ;;  %s1918_s30 = smov 8   ;;  %s1919_s12 = smov 80  }
  0x3a   : > { %572 = vmatpush.msra.mxu1 %v563_v19  ;;  %v554_v36 = vld [vmem:[#allocation5 + $0x20] sm:$0xff]  ;;  %v553_v39 = vld [vmem:[#allocation5 + $0x18] sm:$0xff]  ;;  %v552_v42 = vld [vmem:[#allocation5 + $0x10] sm:$0xff]  ;;  %s458_s14 = sand.u32 1, %s1886_s18   ;;  %s1518_s24 = sshll.u32 %s2001_s21, 3 }
  0x3b   : > { %491 = vmatpush.msra.mxu0 %v476_v5  ;;  %v551_v45 = vld [vmem:[#allocation5 + $0x8] sm:$0xff]  ;;  %v550_v47 = vld [vmem:[#allocation5] sm:$0xff]  ;;  %v644_v17 = vld [vmem:[#allocation7 + $0x50] sm:$0xff]  ;;  %s1488_s15 = sshll.u32 %s458_s14, 3  ;;  %s1350_s21 = scalar_lea.sflag [#allocation4], %s458_s14 }
  0x3c   : > { %573 = vmatpush.msra.mxu1 %v562_v20  ;;  %v643_v20 = vld [vmem:[#allocation7 + $0x48] sm:$0xff] }
  0x3d   : > { %492 = vmatpush.msra.mxu0 %v475_v6 }
  0x3e   : > { %574 = vmatpush.msra.mxu1 %v561_v22  ;;  %v642_v22 = vld [vmem:[#allocation7 + $0x40] sm:$0xff] }
  0x3f   : > { %493 = vmatpush.msra.mxu0 %v474_v7 }
  0x40   : > { %575 = vmatpush.msra.mxu1 %v560_v23 }
  0x41   : > { %494 = vmatpush.msra.mxu0 %v473_v8 }
  0x42   : > { %576 = vmatpush.msra.mxu1 %v559_v25 }
  0x43   : > { %495 = vmatpush.msra.mxu0 %v472_v9 }
  0x44   : > { %577 = vmatpush.msra.mxu1 %v558_v27 }
  0x45   : > { %496 = vmatpush.msra.mxu0 %v471_v10 }
  0x46   : > { %578 = vmatpush.msra.mxu1 %v557_v29 }
  0x47   : > { %497 = vmatpush.msra.mxu0 %v470_v11  ;;  %v649_v11 = vld [vmem:[#allocation7 + $0x78] sm:$0xff] }
  0x48   : > { %579 = vmatpush.msra.mxu1 %v556_v31  ;;  %654 = vmatpush.msra.mxu2 %v649_v11  ;;  %v638_v31 = vld [vmem:[#allocation7 + $0x20] sm:$0xff] }
  0x49   : > { %498 = vmatpush.msra.mxu0 %v469_v12  ;;  %v648_v12 = vld [vmem:[#allocation7 + $0x70] sm:$0xff] }
  0x4a   : > { %580 = vmatpush.msra.mxu1 %v555_v33  ;;  %655 = vmatpush.msra.mxu2 %v648_v12 }
  0x4b   : > { %499 = vmatpush.msra.mxu0 %v468_v13  ;;  %v647_v13 = vld [vmem:[#allocation7 + $0x68] sm:$0xff] }
  0x4c   : > { %581 = vmatpush.msra.mxu1 %v554_v36  ;;  %656 = vmatpush.msra.mxu2 %v647_v13  ;;  %v636_v36 = vld [vmem:[#allocation7 + $0x10] sm:$0xff] }
  0x4d   : > { %500 = vmatpush.msra.mxu0 %v467_v14  ;;  %v1631_v14 = vld [vmem:[%s2268_s4] ss:$0 sm:$0xff] }
  0x4e   : > { %582 = vmatpush.msra.mxu1 %v553_v39  ;;  %v635_v39 = vld [vmem:[#allocation7 + $0x8] sm:$0xff] }
  0x4f   : > { %501 = vmatpush.msra.mxu0 %v466_v15  ;;  %v646_v15 = vld [vmem:[#allocation7 + $0x60] sm:$0xff] }
  0x50   : > { %502 = vmatmul.f32.vlgmr.msra.gmra.mxu0 %v465_v16  ;;  %583 = vmatpush.msra.mxu1 %v552_v42  ;;  %v645_v16 = vld [vmem:[#allocation7 + $0x58] sm:$0xff] }
  0x51   : > { %657 = vmatpush.msra.mxu2 %v646_v15  ;;  %v684_v15 = vld [vmem:[#allocation8 + $0x50] sm:$0xff] }
  0x52   : > { %584 = vmatpush.msra.mxu1 %v551_v45  ;;  %v704_v45 = vld [vmem:[#allocation8 + $0xf0] sm:$0xff] }
  0x53   : > { %658 = vmatpush.msra.mxu2 %v645_v16  ;;  %712 = vmatpush.msra.mxu3 %v704_v45  ;;  %v685_v16 = vld [vmem:[#allocation8 + $0x58] sm:$0xff] }
  0x54   : > { %585 = vmatpush.msra.mxu1 %v550_v47  ;;  %v702_v47 = vld [vmem:[#allocation8 + $0xe0] sm:$0xff] }
  0x55   : > { %659 = vmatpush.msra.mxu2 %v644_v17  ;;  %713 = vmatpush.msra.mxu3 %v702_v47 }
  0x57   : > { %660 = vmatpush.msra.mxu2 %v643_v20  ;;  %v683_v20 = vld [vmem:[#allocation8 + $0x48] sm:$0xff] }
  0x59   : > { %661 = vmatpush.msra.mxu2 %v642_v22 }
  0xcd   : > { %v503_v24 = vpop.f32.mrf.mxu0 }
  0xce   : > { %v504_v26 = vadd.f32 %v1630_v21, %v503_v24  ;;  %v641_v24 = vld [vmem:[#allocation7 + $0x38] sm:$0xff] }
  0xcf   : > { %662 = vmatpush.msra.mxu2 %v641_v24 }
  0xd0   : > { %v507_v28 = vmul.f32 0.70710677, %v504_v26  ;;  %v506_v8 = vmul.f32 0.5, %v504_v26  ;;  %v640_v26 = vld [vmem:[#allocation7 + $0x30] sm:$0xff] }
  0xd1   : > { %663 = vmatpush.msra.mxu2 %v640_v26  ;;  %v681_v26 = vld [vmem:[#allocation8 + $0x38] sm:$0xff] }
  0xd2   : > { %v508_v30 = vmul.f32 %v507_v28, %v507_v28 }
  0xd4   : > { %v509_v32 = vmin.f32 %v508_v30, 16.0 }
  0xd6   : > { %v510_v34 = vmul.f32 2.1237322e-06, %v509_v32  ;;  %v521_v35 = vmul.f32 3.8918573e-05, %v509_v32 }
  0xd8   : > { %v511_v37 = vadd.f32 0.00028619796, %v510_v34  ;;  %v522_v38 = vadd.f32 0.001143296, %v521_v35  ;;  %v637_v34 = vld [vmem:[#allocation7 + $0x18] sm:$0xff] }
  0xda   : > { %v512_v40 = vmul.f32 %v511_v37, %v509_v32  ;;  %v523_v41 = vmul.f32 %v522_v38, %v509_v32 }
  0xdc   : > { %v524_v43 = vadd.f32 0.014752088, %v523_v41  ;;  %v513_v44 = vadd.f32 0.0036580483, %v512_v40  ;;  %v634_v41 = vld [vmem:[#allocation7] sm:$0xff] }
  0xde   : > { %v525_v46 = vmul.f32 %v524_v43, %v509_v32  ;;  %v514_v49 = vmul.f32 %v513_v44, %v509_v32 }
  0xe0   : > { %v526_v48 = vadd.f32 0.112945676, %v525_v46  ;;  %v515_v52 = vadd.f32 0.05243302, %v514_v49  ;;  %v705_v46 = vld [vmem:[#allocation8 + $0xf8] sm:$0xff]  ;;  %v703_v49 = vld [vmem:[#allocation8 + $0xe8] sm:$0xff] }
  0xe1   : > { %732 = vmatpush.msrb.mxu0 %v705_v46 }
  0xe2   : > { %v527_v50 = vmul.f32 %v526_v48, %v509_v32  ;;  %v516_v55 = vmul.f32 %v515_v52, %v509_v32  ;;  %v701_v52 = vld [vmem:[#allocation8 + $0xd8] sm:$0xff] }
  0xe3   : > { %733 = vmatpush.msrb.mxu0 %v703_v49 }
  0xe4   : > { %v528_v51 = vadd.f32 0.4994258, %v527_v50  ;;  %v517_v56 = vadd.f32 0.18741608, %v516_v55  ;;  %v699_v55 = vld [vmem:[#allocation8 + $0xc8] sm:$0xff] }
  0xe5   : > { %734 = vmatpush.msrb.mxu0 %v701_v52 }
  0xe6   : > { %v529_v53 = vmul.f32 %v528_v51, %v509_v32  ;;  %v518_v58 = vmul.f32 %v517_v56, %v509_v32  ;;  %v700_v51 = vld [vmem:[#allocation8 + $0xd0] sm:$0xff] }
  0xe7   : > { %714 = vmatpush.msra.mxu3 %v700_v51  ;;  %735 = vmatpush.msrb.mxu0 %v699_v55 }
  0xe8   : > { %v530_v54 = vadd.f32 1.0, %v529_v53  ;;  %v519_v62 = vadd.f32 1.1283791, %v518_v58  ;;  %v696_v58 = vld [vmem:[#allocation8 + $0xb0] sm:$0xff] }
  0xea   : > { %1634 = vrcp.f32 %v530_v54  ;;  %v542_v61 = vand.u32 2147483648, %v530_v54  ;;  %v540_v0 = vand.u32 2147483647, %v530_v54  ;;  %vm536_vm1 = vweird.f32 %v530_v54 }
  0xeb   : > { %v520_v3 = vmul.f32 %v519_v62, %v507_v28  ;;  %v639_v28 = vld [vmem:[#allocation7 + $0x28] sm:$0xff] }
  0xec   : > { %v543_v2 = vor.u32 1.1754944e-38, %v542_v61  ;;  %vm541_vm3 = vcmp.eq.f32.partialorder %v540_v0, 8.507059e+37  ;;  %664 = vmatpush.msra.mxu2 %v639_v28  ;;  %v695_v61 = vld [vmem:[#allocation8 + $0xa8] sm:$0xff]  ;;  %v693_v0 = vld [vmem:[#allocation8 + $0x98] sm:$0xff] }
  0xee   : > { %665 = vmatpush.msra.mxu2 %v638_v31 }
  0xf0   : > { %v1635_v57 = vpop.eup %1634  ;;  %666 = vmatpush.msra.mxu2 %v637_v34 }
  0xf1   : > { %v532_v59 = vmul.f32 %v1635_v57, %v530_v54  ;;  %vm537_vm0 = vweird.f32 %v1635_v57  ;;  %v698_v54 = vld [vmem:[#allocation8 + $0xc0] sm:$0xff] }
  0xf2   : > { %vm538_vm2 = vmor %vm536_vm1, %vm537_vm0  ;;  %667 = vmatpush.msra.mxu2 %v636_v36  ;;  %715 = vmatpush.msra.mxu3 %v698_v54  ;;  %v674_v36 = vld [vmem:[#allocation8] sm:$0xff] }
  0xf3   : > { %v533_v60 = vsub.f32 1.0, %v532_v59  ;;  %v697_v59 = vld [vmem:[#allocation8 + $0xb8] sm:$0xff] }
  0xf4   : > { %668 = vmatpush.msra.mxu2 %v635_v39  ;;  %716 = vmatpush.msra.mxu3 %v696_v58 }
  0xf5   : > { %v534_v63 = vmul.f32 %v1635_v57, %v533_v60  ;;  %v694_v60 = vld [vmem:[#allocation8 + $0xa0] sm:$0xff]  ;;  %736 = vmatpush.msrb.mxu0 %v697_v59 }
  0xf6   : > { %669 = vmatpush.msra.mxu2 %v634_v41  ;;  %717 = vmatpush.msra.mxu3 %v694_v60 }
  0xf7   : > { %v535_v1 = vadd.f32 %v1635_v57, %v534_v63  ;;  %v692_v63 = vld [vmem:[#allocation8 + $0x90] sm:$0xff]  ;;  %737 = vmatpush.msrb.mxu0 %v695_v61 }
  0xf8   : > { %718 = vmatpush.msra.mxu3 %v692_v63 }
  0xf9   : > { %v539_v4 = vsel %vm538_vm2, %v1635_v57, %v535_v1  ;;  %v690_v1 = vld [vmem:[#allocation8 + $0x80] sm:$0xff]  ;;  %738 = vmatpush.msrb.mxu0 %v693_v0 }
  0xfa   : > { %v544_v5 = vsel %vm541_vm3, %v543_v2, %v539_v4  ;;  %v691_v2 = vld [vmem:[#allocation8 + $0x88] sm:$0xff]  ;;  %719 = vmatpush.msra.mxu3 %v690_v1 }
  0xfb   : > { %v545_v6 = vmul.f32 %v544_v5, %v520_v3  ;;  %739 = vmatpush.msrb.mxu0 %v691_v2 }
  0xfd   : > { %v1490_v7 = vclamps-f32 %v545_v6, 1.0  ;;  %v688_v6 = vld [vmem:[#allocation8 + $0x70] sm:$0xff] }
  0xfe   : > { %720 = vmatpush.msra.mxu3 %v688_v6 }
  0xff   : > { %v548_v9 = vadd.f32 1.0, %v1490_v7  ;;  %v689_v7 = vld [vmem:[#allocation8 + $0x78] sm:$0xff] }
 0x100   : > { %740 = vmatpush.msrb.mxu0 %v689_v7 }
 0x101   : > { %v549_v10 = vmul.f32 %v548_v9, %v506_v8  ;;  %v686_v9 = vld [vmem:[#allocation8 + $0x60] sm:$0xff] }
 0x102   : > { %721 = vmatpush.msra.mxu3 %v686_v9 }
 0x103   : > { %586 = vmatmul.f32.vlgmr.msra.gmra.mxu1 %v549_v10  ;;  %v687_v10 = vld [vmem:[#allocation8 + $0x68] sm:$0xff] }
 0x104   : > { %741 = vmatpush.msrb.mxu0 %v687_v10  ;;  %722 = vmatpush.msra.mxu3 %v684_v15 }
 0x106   : > { %742 = vmatpush.msrb.mxu0 %v685_v16 }
 0x108   : > { %743 = vmatpush.msrb.mxu0 %v683_v20 }
 0x10a   : > { %744 = vmatpush.msrb.mxu0 %v681_v26 }
 0x180   : > { %v587_v18 = vpop.f32.mrf.mxu1 }
 0x181   : > { %v2091_v19 = vadd.f32 %v1631_v14, %v587_v18  ;;  %v682_v18 = vld [vmem:[#allocation8 + $0x40] sm:$0xff] }
 0x182   : > { %723 = vmatpush.msra.mxu3 %v682_v18 }
 0x183   : > { %v2094_v21 = vmul.f32 0.70710677, %v2091_v19 }
 0x185   : > { %v592_v23 = vmul.f32 %v2094_v21, %v2094_v21 }
 0x187   : > { %v2098_v25 = vmin.f32 %v592_v23, 16.0 }
 0x189   : > { %v594_v27 = vmul.f32 2.1237322e-06, %v2098_v25  ;;  %v605_v29 = vmul.f32 3.8918573e-05, %v2098_v25 }
 0x18b   : > { %v595_v30 = vadd.f32 0.00028619796, %v594_v27  ;;  %v606_v32 = vadd.f32 0.001143296, %v605_v29  ;;  %v678_v29 = vld [vmem:[#allocation8 + $0x20] sm:$0xff] }
 0x18d   : > { %v596_v33 = vmul.f32 %v595_v30, %v2098_v25  ;;  %v607_v35 = vmul.f32 %v606_v32, %v2098_v25  ;;  %v679_v30 = vld [vmem:[#allocation8 + $0x28] sm:$0xff]  ;;  %v590_v32 = vmul.f32 0.5, %v2091_v19  ;;  %v706_v19 = vld [vmem:[%s2272_s8] sm:$0x3] }
 0x18e   : > { %745 = vmatpush.msrb.mxu0 %v679_v30  ;;  %v709_v41 = vperm.slane %v706_v19, 1 }
 0x18f   : > { %v608_v37 = vadd.f32 0.014752088, %v607_v35  ;;  %v597_v38 = vadd.f32 0.0036580483, %v596_v33  ;;  %v677_v35 = vld [vmem:[#allocation8 + $0x18] sm:$0xff] }
 0x190   : > { %746 = vmatpush.msrb.mxu0 %v677_v35 }
 0x191   : > { %v609_v40 = vmul.f32 %v608_v37, %v2098_v25  ;;  %v598_v43 = vmul.f32 %v597_v38, %v2098_v25  ;;  %v675_v37 = vld [vmem:[#allocation8 + $0x8] sm:$0xff]  ;;  %v1632_v38 = vld [vmem:[%s2270_s6] ss:$0 sm:$0xff] }
 0x192   : > { %747 = vmatpush.msrb.mxu0 %v675_v37 }
 0x193   : > { %v610_v42 = vadd.f32 0.112945676, %v609_v40  ;;  %v599_v50 = vadd.f32 0.05243302, %v598_v43 }
 0x195   : > { %v611_v44 = vmul.f32 %v610_v42, %v2098_v25  ;;  %v600_v57 = vmul.f32 %v599_v50, %v2098_v25 }
 0x197   : > { %v612_v48 = vadd.f32 0.4994258, %v611_v44  ;;  %v601_v62 = vadd.f32 0.18741608, %v600_v57  ;;  %v708_v44 = vperm.slane %v706_v19, 0 }
 0x199   : > { %v613_v53 = vmul.f32 %v612_v48, %v2098_v25  ;;  %v602_v4 = vmul.f32 %v601_v62, %v2098_v25  ;;  %v680_v25 = vld [vmem:[#allocation8 + $0x30] sm:$0xff] }
 0x19a   : > { %724 = vmatpush.msra.mxu3 %v680_v25 }
 0x19b   : > { %v614_v56 = vadd.f32 1.0, %v613_v53  ;;  %v603_v12 = vadd.f32 1.1283791, %v602_v4 }
 0x19c   : > { %725 = vmatpush.msra.mxu3 %v678_v29 }
 0x19d   : > { %1636 = vrcp.f32 %v614_v56  ;;  %v626_v11 = vand.u32 2147483648, %v614_v56  ;;  %v624_v14 = vand.u32 2147483647, %v614_v56  ;;  %vm620_vm5 = vweird.f32 %v614_v56 }
 0x19e   : > { %v604_v23 = vmul.f32 %v603_v12, %v2094_v21  ;;  %v676_v21 = vld [vmem:[#allocation8 + $0x10] sm:$0xff] }
 0x19f   : > { %v627_v22 = vor.u32 1.1754944e-38, %v626_v11  ;;  %vm625_vm7 = vcmp.eq.f32.partialorder %v624_v14, 8.507059e+37  ;;  %726 = vmatpush.msra.mxu3 %v676_v21 }
 0x1a1   : > { %727 = vmatpush.msra.mxu3 %v674_v36 }
 0x1a3   : > { %v1637_v3 = vpop.eup %1636 }
 0x1a4   : > { %v616_v5 = vmul.f32 %v1637_v3, %v614_v56  ;;  %vm621_vm4 = vweird.f32 %v1637_v3 }
 0x1a5   : > { %vm622_vm6 = vmor %vm620_vm5, %vm621_vm4 }
 0x1a6   : > { %v617_v8 = vsub.f32 1.0, %v616_v5 }
 0x1a8   : > { %v618_v13 = vmul.f32 %v1637_v3, %v617_v8 }
 0x1aa   : > { %v619_v17 = vadd.f32 %v1637_v3, %v618_v13 }
 0x1ac   : > { %v623_v24 = vsel %vm622_vm6, %v1637_v3, %v619_v17 }
 0x1ad   : > { %v628_v27 = vsel %vm625_vm7, %v627_v22, %v623_v24 }
 0x1ae   : > { %v629_v28 = vmul.f32 %v628_v27, %v604_v23 }
 0x1b0   : > { %v1491_v31 = vclamps-f32 %v629_v28, 1.0 }
 0x1b2   : > { %v632_v33 = vadd.f32 1.0, %v1491_v31 }
 0x1b4   : > { %v633_v34 = vmul.f32 %v632_v33, %v590_v32 }
 0x1b6   : > { %670 = vmatmul.f32.vlgmr.msra.gmra.mxu2 %v633_v34 }
 0x239   : > { %v671_v39 = vpop.f32.mrf.mxu2 }
 0x23a   : > { %v2115_v40 = vadd.f32 %v1632_v38, %v671_v39 }
 0x23c   : > { %728 = vmatmul.f32.vlgmr.msra.gmra.mxu3 %v2115_v40  ;;  %748 = vmatmul.f32.vlgmr.msrb.gmra.mxu0 %v2115_v40 }
 0x2b9   : > { %v749_v42 = vpop.f32.mrf.mxu0 }
 0x2ba   : > { %v2122_v43 = vadd.f32 %v749_v42, %v709_v41 }
 0x2bc   : > { %809 = vmatpush.msrb.mxu2 %v2122_v43 }
 0x2bf   : > { %v729_v45 = vpop.f32.mrf.mxu3 }
 0x2c0   : > { %v2125_v46 = vadd.f32 %v729_v45, %v708_v44 }
 0x2c2   : > { %814 = vrot.lane.b32.xlu2 %v2125_v46, %s1905_s3  ;;  %753 = vrot.lane.b32.xlu0 %v2125_v46, %s1906_s25 }
 0x2ca   : > { %882 = vrot.lane.b32.xlu2 %v2125_v46, %s1907_s26 }
 0x2d2   : > { %880 = vrot.lane.b32.xlu2 %v2125_v46, %s1908_s16 }
 0x31c   : > { %v815_v47 = vpop.permute.xlu2 %814 }
 0x324   : > { %v883_v48 = vpop.permute.xlu2 %882 }
 0x325   : > { %1498 = vmatpush.xpose.msk.msra.mxu2 %vm755_vm8, %v883_v48 }
 0x32c   : > { %v881_v60 = vpop.permute.xlu2 %880 }
 0x334   : > { %v754_v49 = vpop.permute.xlu0 %753 }
 0x335   : > { %1492 = vmatpush.xpose.msk.msrb.mxu1 %vm755_vm8, %v754_v49 }
 0x338   : > { %1493 = vmatmul.msk.f32.vlgmr.msrb.gmra.mxu1 %vm755_vm8, %v2125_v46 }
 0x3b5   : > { %v777_v50 = vpop.f32.mrf.mxu1 }
 0x3b6   : > { %v780_v51 = vsel %vm755_vm8, %v777_v50, -inf }
 0x3b7   : > { %781 = vmax.xlane.f32.xlu0 %v780_v51 }
 0x42a   : > { %v782_v52 = vpop.xlane.xlu0 %781 }
 0x42b   : > { %v783_v53 = vsub.f32 %v777_v50, %v782_v52 }
 0x42d   : > { %v784_v54 = vmul.f32 1.442695, %v783_v53 }
 0x42f   : > { %1638 = vpow2.f32 %v784_v54 }
 0x435   : > { %v1639_v55 = vpop.eup %1638 }
 0x436   : > { %v786_v56 = vsel %vm755_vm8, %v1639_v55, 0.0 }
 0x437   : > { %787 = vadd.xlane.f32.xlu1 %v786_v56 }
 0x450   : > { %816 = vrot.lane.b32.xlu1 %v2125_v46, %s1909_s7 }
 0x4aa   : > { %v788_v57 = vpop.xlane.xlu1 %787 }
 0x4ab   : > { %1640 = vrcp.f32 %v788_v57 }
 0x4b1   : > { %v1641_v58 = vpop.eup %1640 }
 0x4b2   : > { %v790_v59 = vmul.f32 %v1641_v58, %v1639_v55 }
 0x4b4   : > { %1494 = vmatmul.msk.f32.vlgmr.msrb.gmra.mxu2 %vm755_vm8, %v790_v59 }
 0x4bc   : > { %1499 = vmatmul.msk.f32.vlgmr.msra.gmra.mxu2 %vm755_vm8, %v881_v60 }
 0x4c2   : > { %v817_v61 = vpop.permute.xlu1 %816 }
 0x4c3   : > { %1495 = vmatpush.xpose.msk.msrb.mxu3 %vm755_vm8, %v817_v61 }
 0x4c6   : > { %1496 = vmatmul.msk.f32.vlgmr.msrb.gmra.mxu3 %vm755_vm8, %v815_v47 }
 0x537   : > { %v2146_v62 = vpop.f32.mrf.mxu2 }
 0x53f   : > { %v905_v63 = vpop.f32.mrf.mxu2 }
 0x540   : > { %v908_v0 = vsel %vm755_vm8, %v905_v63, -inf }
 0x541   : > { %909 = vmax.xlane.f32.xlu1 %v908_v0 }
 0x549   : > { %v839_v1 = vpop.f32.mrf.mxu3 }
 0x54a   : > { %v842_v2 = vsel %vm755_vm8, %v839_v1, -inf }
 0x54b   : > { %843 = vmax.xlane.f32.xlu2 %v842_v2 }
 0x55a   : > { %945 = vrot.lane.b32.xlu1 %v2125_v46, %s1910_s19 }
 0x5b4   : > { %v910_v3 = vpop.xlane.xlu1 %909 }
 0x5b5   : > { %v911_v4 = vsub.f32 %v905_v63, %v910_v3 }
 0x5b7   : > { %v912_v5 = vmul.f32 1.442695, %v911_v4 }
 0x5b9   : > { %1642 = vpow2.f32 %v912_v5 }
 0x5be   : > { %v844_v6 = vpop.xlane.xlu2 %843 }
 0x5bf   : > { %v1643_v7 = vpop.eup %1642  ;;  %v845_v8 = vsub.f32 %v839_v1, %v844_v6 }
 0x5c0   : > { %v914_v9 = vsel %vm755_vm8, %v1643_v7, 0.0 }
 0x5c1   : > { %v846_v10 = vmul.f32 1.442695, %v845_v8  ;;  %915 = vadd.xlane.f32.xlu2 %v914_v9 }
 0x5c3   : > { %1644 = vpow2.f32 %v846_v10 }
 0x5c9   : > { %v1645_v11 = vpop.eup %1644 }
 0x5ca   : > { %v848_v12 = vsel %vm755_vm8, %v1645_v11, 0.0 }
 0x5cb   : > { %849 = vadd.xlane.f32.xlu0 %v848_v12 }
 0x5cc   : > { %v946_v24 = vpop.permute.xlu1 %945 }
 0x5d9   : > { %947 = vrot.lane.b32.xlu2 %v2125_v46, %s1911_s17 }
 0x5df   : > { %854 = vrot.lane.b32.xlu0 %v2122_v43, %s1905_s3 }
 0x5e7   : > { %919 = vrot.lane.b32.xlu0 %v2122_v43, %s1908_s16 }
 0x5ef   : > { %1012 = vrot.lane.b32.xlu0 %v2125_v46, %s1912_s20 }
 0x5f7   : > { %1010 = vrot.lane.b32.xlu0 %v2125_v46, %s1913_s23 }
 0x634   : > { %v916_v14 = vpop.xlane.xlu2 %915 }
 0x63c   : > { %v948_v18 = vpop.permute.xlu2 %947 }
 0x63e   : > { %v850_v13 = vpop.xlane.xlu0 %849 }
 0x63f   : > { %1646 = vrcp.f32 %v850_v13 }
 0x640   : > { %1648 = vrcp.f32 %v916_v14 }
 0x645   : > { %v1647_v15 = vpop.eup %1646 }
 0x646   : > { %v852_v16 = vmul.f32 %v1647_v15, %v1645_v11  ;;  %v1649_v20 = vpop.eup %1648 }
 0x647   : > { %v918_v22 = vmul.f32 %v1649_v20, %v1643_v7 }
 0x651   : > { %v855_v17 = vpop.permute.xlu0 %854 }
 0x652   : > { %875 = vmatpush.msra.mxu1 %v855_v17 }
 0x653   : > { %1497 = vmatmul.msk.f32.vlgmr.msra.gmra.mxu1 %vm755_vm8, %v852_v16 }
 0x654   : > { %1501 = vmatpush.xpose.msk.msrb.mxu1 %vm755_vm8, %v948_v18 }
 0x659   : > { %v920_v23 = vpop.permute.xlu0 %919 }
 0x65a   : > { %940 = vmatpush.msra.mxu3 %v920_v23 }
 0x65b   : > { %1500 = vmatmul.msk.f32.vlgmr.msra.gmra.mxu3 %vm755_vm8, %v918_v22  ;;  %1502 = vmatmul.msk.f32.vlgmr.msrb.gmra.mxu1 %vm755_vm8, %v946_v24 }
 0x661   : > { %v1013_v25 = vpop.permute.xlu0 %1012 }
 0x662   : > { %1504 = vmatpush.xpose.msk.msrb.mxu3 %vm755_vm8, %v1013_v25 }
 0x669   : > { %v1011_v26 = vpop.permute.xlu0 %1010 }
 0x66a   : > { %1505 = vmatmul.msk.f32.vlgmr.msrb.gmra.mxu3 %vm755_vm8, %v1011_v26 }
 0x6d0   : > { %v2170_v27 = vpop.f32.mrf.mxu1 }
 0x6d8   : > { %v970_v28 = vpop.f32.mrf.mxu1 }
 0x6d9   : > { %v973_v29 = vsel %vm755_vm8, %v970_v28, -inf }
 0x6da   : > { %974 = vmax.xlane.f32.xlu2 %v973_v29 }
 0x6de   : > { %v2173_v30 = vpop.f32.mrf.mxu3 }
 0x6ed   : > { %v1035_v31 = vpop.f32.mrf.mxu3 }
 0x6ee   : > { %v1038_v32 = vsel %vm755_vm8, %v1035_v31, -inf }
 0x6ef   : > { %1039 = vmax.xlane.f32.xlu1 %v1038_v32 }
 0x6f2   : > { %984 = vrot.lane.b32.xlu2 %v2122_v43, %s1910_s19  ;;  %s460_s19 = scalar_lea.vmem [#allocation11], %s1488_s15 }
 0x708   : > { %1077 = vrot.lane.b32.xlu1 %v2125_v46, %s1914_s27 }
 0x710   : > { %1205 = vrot.lane.b32.xlu1 %v2125_v46, %s1915_s28 }
 0x718   : > { %1142 = vrot.lane.b32.xlu1 %v2125_v46, %s1916_s29 }
 0x74d   : > { %v975_v33 = vpop.xlane.xlu2 %974 }
 0x74e   : > { %v976_v34 = vsub.f32 %v970_v28, %v975_v33  ;;  %v1318_v33 = vld [vmem:[#allocation10 + $0x38] sm:$0xff] }
 0x74f   : > { %1335 = vmatpush.msra.mxu0 %v1318_v33 }
 0x750   : > { %v977_v21 = vmul.f32 1.442695, %v976_v34  ;;  %v1317_v34 = vld [vmem:[#allocation10 + $0x30] sm:$0xff] }
 0x751   : > { %1336 = vmatpush.msra.mxu0 %v1317_v34 }
 0x752   : > { %1650 = vpow2.f32 %v977_v21  ;;  %v1316_v21 = vld [vmem:[#allocation10 + $0x28] sm:$0xff] }
 0x753   : > { %1337 = vmatpush.msra.mxu0 %v1316_v21 }
 0x755   : > { %v985_v35 = vpop.permute.xlu2 %984 }
 0x756   : > { %1005 = vmatpush.msrb.mxu2 %v985_v35  ;;  %v1315_v35 = vld [vmem:[#allocation10 + $0x20] sm:$0xff] }
 0x757   : > { %1338 = vmatpush.msra.mxu0 %v1315_v35 }
 0x758   : > { %v1651_v36 = vpop.eup %1650 }
 0x759   : > { %v979_v37 = vsel %vm755_vm8, %v1651_v36, 0.0 }
 0x75a   : > { %980 = vadd.xlane.f32.xlu0 %v979_v37  ;;  %v1313_v37 = vld [vmem:[#allocation10 + $0x10] sm:$0xff] }
 0x762   : > { %v1040_v38 = vpop.xlane.xlu1 %1039 }
 0x763   : > { %v1041_v39 = vsub.f32 %v1035_v31, %v1040_v38  ;;  %v1312_v38 = vld [vmem:[#allocation10 + $0x8] sm:$0xff] }
 0x765   : > { %v1042_v19 = vmul.f32 1.442695, %v1041_v39  ;;  %v1311_v39 = vld [vmem:[#allocation10] sm:$0xff] }
 0x767   : > { %1652 = vpow2.f32 %v1042_v19 }
 0x76d   : > { %v1653_v41 = vpop.eup %1652 }
 0x76e   : > { %1075 = vrot.lane.b32.xlu0 %v2125_v46, %s1917_s22  ;;  %v1044_v42 = vsel %vm755_vm8, %v1653_v41, 0.0 }
 0x76f   : > { %1045 = vadd.xlane.f32.xlu2 %v1044_v42 }
 0x776   : > { %1207 = vrot.lane.b32.xlu0 %v2125_v46, %s1918_s30 }
 0x77a   : > { %v1078_v44 = vpop.permute.xlu1 %1077 }
 0x77b   : > { %1507 = vmatpush.xpose.msk.msra.mxu2 %vm755_vm8, %v1078_v44 }
 0x77e   : > { %1049 = vrot.lane.b32.xlu0 %v2122_v43, %s1913_s23 }
 0x782   : > { %v1206_v51 = vpop.permute.xlu1 %1205 }
 0x786   : > { %1140 = vrot.lane.b32.xlu0 %v2125_v46, %s1919_s12 }
 0x78a   : > { %v1143_v55 = vpop.permute.xlu1 %1142 }
 0x7cd   : > { %v981_v45 = vpop.xlane.xlu0 %980 }
 0x7ce   : > { %1654 = vrcp.f32 %v981_v45 }
 0x7d4   : > { %v1655_v47 = vpop.eup %1654 }
 0x7d5   : > { %v983_v48 = vmul.f32 %v1655_v47, %v1651_v36  ;;  %v1314_v36 = vld [vmem:[#allocation10 + $0x18] sm:$0xff] }
 0x7d6   : > { %1339 = vmatpush.msra.mxu0 %v1314_v36 }
 0x7d7   : > { %1503 = vmatmul.msk.f32.vlgmr.msrb.gmra.mxu2 %vm755_vm8, %v983_v48 }
 0x7d8   : > { %1340 = vmatpush.msra.mxu0 %v1313_v37 }
 0x7da   : > { %1341 = vmatpush.msra.mxu0 %v1312_v38 }
 0x7dc   : > { %1342 = vmatpush.msra.mxu0 %v1311_v39 }
 0x7e0   : > { %v1076_v49 = vpop.permute.xlu0 %1075 }
 0x7e1   : > { %1508 = vmatmul.msk.f32.vlgmr.msra.gmra.mxu2 %vm755_vm8, %v1076_v49 }
 0x7e2   : > { %v1046_v50 = vpop.xlane.xlu2 %1045 }
 0x7e3   : > { %1656 = vrcp.f32 %v1046_v50 }
 0x7e8   : > { %v1208_v52 = vpop.permute.xlu0 %1207 }
 0x7e9   : > { %1513 = vmatpush.xpose.msk.msrb.mxu2 %vm755_vm8, %v1208_v52  ;;  %v1657_v53 = vpop.eup %1656 }
 0x7ea   : > { %v1048_v54 = vmul.f32 %v1657_v53, %v1653_v41 }
 0x7ec   : > { %1514 = vmatmul.msk.f32.vlgmr.msrb.gmra.mxu2 %vm755_vm8, %v1206_v51 }
 0x7f0   : > { %v1050_v46 = vpop.permute.xlu0 %1049 }
 0x7f1   : > { %1070 = vmatpush.msra.mxu1 %v1050_v46  ;;  %v1633_v46 = vld [vmem:[%s2274_s10] ss:$0 sm:$0xff] }
 0x7f2   : > { %1506 = vmatmul.msk.f32.vlgmr.msra.gmra.mxu1 %vm755_vm8, %v1048_v54 }
 0x7f3   : > { %1510 = vmatpush.xpose.msk.msrb.mxu1 %vm755_vm8, %v1143_v55 }
 0x7f8   : > { %v1141_v56 = vpop.permute.xlu0 %1140 }
 0x7fa   : > { %1511 = vmatmul.msk.f32.vlgmr.msrb.gmra.mxu1 %vm755_vm8, %v1141_v56 }
 0x85a   : > { %v1007_v57 = vpop.f32.mrf.mxu2 }
 0x864   : > { %v1100_v58 = vpop.f32.mrf.mxu2 }
 0x865   : > { %v1103_v59 = vsel %vm755_vm8, %v1100_v58, -inf }
 0x866   : > { %1104 = vmax.xlane.f32.xlu1 %v1103_v59 }
 0x86f   : > { %v1072_v60 = vpop.f32.mrf.mxu1  ;;  %v1230_v61 = vpop.f32.mrf.mxu2 }
 0x870   : > { %v1233_v63 = vsel %vm755_vm8, %v1230_v61, -inf }
 0x871   : > { %1234 = vmax.xlane.f32.xlu0 %v1233_v63 }
 0x877   : > { %v1165_v0 = vpop.f32.mrf.mxu1 }
 0x878   : > { %v1168_v1 = vsel %vm755_vm8, %v1165_v0, -inf }
 0x879   : > { %1169 = vmax.xlane.f32.xlu2 %v1168_v1 }
 0x87f   : > { %1114 = vrot.lane.b32.xlu1 %v2122_v43, %s1917_s22  ;;  %s1840_s22 = scalar_lea.hbm %s2275_s11, 16 }
 0x885   : > { %1244 = vrot.lane.b32.xlu0 %v2122_v43, %s1915_s28 }
 0x887   : > { %1275 = vrot.lane.b32.xlu1 %v2173_v30, %s1916_s29 }
 0x88d   : > { %1271 = vrot.lane.b32.xlu0 %v2170_v27, %s1918_s30 }
 0x88f   : > { %1283 = vrot.lane.b32.xlu1 %v1072_v60, %s1912_s20 }
 0x895   : > { %1279 = vrot.lane.b32.xlu0 %v1007_v57, %s1914_s27 }
 0x8d9   : > { %v1105_v2 = vpop.xlane.xlu1 %1104 }
 0x8da   : > { %v1106_v3 = vsub.f32 %v1100_v58, %v1105_v2 }
 0x8dc   : > { %v1107_v4 = vmul.f32 1.442695, %v1106_v3 }
 0x8de   : > { %1658 = vpow2.f32 %v1107_v4 }
 0x8e4   : > { %v1659_v5 = vpop.eup %1658  ;;  %v1235_v6 = vpop.xlane.xlu0 %1234 }
 0x8e5   : > { %v1236_v7 = vsub.f32 %v1230_v61, %v1235_v6  ;;  %v1109_v8 = vsel %vm755_vm8, %v1659_v5, 0.0 }
 0x8e6   : > { %1110 = vadd.xlane.f32.xlu2 %v1109_v8 }
 0x8e7   : > { %v1237_v9 = vmul.f32 1.442695, %v1236_v7 }
 0x8e9   : > { %1660 = vpow2.f32 %v1237_v9 }
 0x8ec   : > { %v1170_v10 = vpop.xlane.xlu2 %1169 }
 0x8ed   : > { %v1171_v11 = vsub.f32 %v1165_v0, %v1170_v10 }
 0x8ef   : > { %v1661_v12 = vpop.eup %1660  ;;  %v1172_v13 = vmul.f32 1.442695, %v1171_v11 }
 0x8f0   : > { %v1239_v14 = vsel %vm755_vm8, %v1661_v12, 0.0 }
 0x8f1   : > { %1662 = vpow2.f32 %v1172_v13  ;;  %1240 = vadd.xlane.f32.xlu2 %v1239_v14  ;;  %v1115_v15 = vpop.permute.xlu1 %1114 }
 0x8f2   : > { %1135 = vmatpush.msra.mxu3 %v1115_v15 }
 0x8f7   : > { %v1663_v16 = vpop.eup %1662  ;;  %v1245_v17 = vpop.permute.xlu0 %1244 }
 0x8f8   : > { %1265 = vmatpush.msrb.mxu3 %v1245_v17  ;;  %v1174_v18 = vsel %vm755_vm8, %v1663_v16, 0.0 }
 0x8f9   : > { %1175 = vadd.xlane.f32.xlu2 %v1174_v18  ;;  %v1276_v41 = vpop.permute.xlu1 %1275 }
 0x8ff   : > { %v1272_v19 = vpop.permute.xlu0 %1271 }
 0x900   : > { %v1298_v42 = vsel %vm755_vm8, %v2146_v62, %v1272_v19 }
 0x901   : > { %v1284_v45 = vpop.permute.xlu1 %1283  ;;  %v1300_v47 = vsel %vm1299_vm9, %v1298_v42, %v1276_v41 }
 0x907   : > { %v1280_v44 = vpop.permute.xlu0 %1279 }
 0x908   : > { %v1302_v48 = vsel %vm1301_vm10, %v1300_v47, %v1280_v44 }
 0x909   : > { %v1304_v50 = vsel %vm1303_vm11, %v1302_v48, %v1284_v45 }
 0x911   : > { %1179 = vrot.lane.b32.xlu2 %v2122_v43, %s1919_s12 }
 0x959   : > { %v1111_v20 = vpop.xlane.xlu2 %1110 }
 0x95a   : > { %1664 = vrcp.f32 %v1111_v20 }
 0x960   : > { %v1665_v22 = vpop.eup %1664 }
 0x961   : > { %v1113_v23 = vmul.f32 %v1665_v22, %v1659_v5 }
 0x963   : > { %1509 = vmatmul.msk.f32.vlgmr.msra.gmra.mxu3 %vm755_vm8, %v1113_v23 }
 0x964   : > { %v1241_v24 = vpop.xlane.xlu2 %1240 }
 0x965   : > { %1666 = vrcp.f32 %v1241_v24 }
 0x96b   : > { %v1667_v25 = vpop.eup %1666 }
 0x96c   : > { %v1243_v26 = vmul.f32 %v1667_v25, %v1661_v12  ;;  %v1176_v27 = vpop.xlane.xlu2 %1175 }
 0x96d   : > { %1668 = vrcp.f32 %v1176_v27 }
 0x96e   : > { %1515 = vmatmul.msk.f32.vlgmr.msrb.gmra.mxu3 %vm755_vm8, %v1243_v26 }
 0x973   : > { %v1669_v28 = vpop.eup %1668 }
 0x974   : > { %v1178_v29 = vmul.f32 %v1669_v28, %v1663_v16  ;;  %v1180_v30 = vpop.permute.xlu2 %1179 }
 0x975   : > { %1200 = vmatpush.msra.mxu1 %v1180_v30 }
 0x976   : > { %1512 = vmatmul.msk.f32.vlgmr.msra.gmra.mxu1 %vm755_vm8, %v1178_v29 }
 0x9e6   : > { %v1137_v43 = vpop.f32.mrf.mxu3 }
 0x9e7   : > { %1287 = vrot.lane.b32.xlu2 %v1137_v43, %s1911_s17  ;;  %s1362_s17 = sshll.u32 %s460_s19, 4  ;;  %s1363_s17 = int_to_ptr.vmem [resolvable:$true] %s1362_s17 }
 0x9f1   : > { %v1267_v31 = vpop.f32.mrf.mxu3 }
 0x9f2   : > { %1295 = vrot.lane.b32.xlu1 %v1267_v31, %s1909_s7  ;;  %s1360_s7 = scalar_lea.hbm %s2275_s11, %s1518_s24 }
 0x9f3   : > { %v1202_v32 = vpop.f32.mrf.mxu1  ;;  %s1364_s20 = sshll.u32 %s1360_s7, 4  ;;  %s1365_s20 = int_to_ptr.hbm [resolvable:$true] %s1364_s20 }
 0x9f4   : > { %1291 = vrot.lane.b32.xlu0 %v1202_v32, %s1907_s26  ;;  %s1834_s23 = sshra.s32 %s1365_s20, 4  ;;  %s1835_s23 = int_to_ptr.hbm [resolvable:$true] %s1834_s23 }
 0x9f5   : > { %s1836_s27 = scalar_lea.hbm %s1835_s23, 8  ;;  %p1841_p3 = scmp.lt.s32.totalorder %s1835_s23, %s2275_s11 }
 0x9f6   : > { %p1837_p0 = scmp.ne.s32.totalorder %s1835_s23, %s1836_s27  ;;  %p1842_p4 = scmp.lt.s32.totalorder %s1840_s22, %s1836_s27 }
 0x9f8   : > { %p1838_p1 = pnand %p1837_p0, %p2018_p5  ;;  %p1843_p7 = por %p1842_p4, %p1841_p3 }
 0x9fa   : > { %p1839_p2 = pneg %p1838_p1 }
 0x9fc   : > { %p1844_p8 = pnand %p1843_p7, %p1839_p2 }
 0xa41   : > { %v1288_v49 = vpop.permute.xlu2 %1287 }
 0xa42   : > { %v1306_v51 = vsel %vm1305_vm12, %v1304_v50, %v1288_v49 }
 0xa64   : > { %v1296_v53 = vpop.permute.xlu1 %1295 }
 0xa66   : > { %v1292_v52 = vpop.permute.xlu0 %1291 }
 0xa67   : > { %v1308_v54 = vsel %vm1307_vm13, %v1306_v51, %v1292_v52 }
 0xa68   : > { %v1310_v62 = vsel %vm1309_vm14, %v1308_v54, %v1296_v53 }
 0xa69   : > { %1516 = vmatmul.msk.f32.vlgmr.msra.gmra.mxu0 %vm1323_vm15, %v1310_v62 }
 0xae6   : > { %v1344_v55 = vpop.f32.mrf.mxu0 }
 0xae7   : > { %v1345_v56 = vadd.f32 %v1633_v46, %v1344_v55 }
 0xae9   : > { %v1347_v57 = vadd.f32 %v1345_v56, %v2115_v40 }
 0xaeb   : > { %1348 = vst [vmem:[%s460_s19] sm:$0xff] %v1347_v57 }
 0xaec   : > { %1847 = shalt.err (!%p1844_p8)
}
 0xaed   : > { %1541 = dma.vmem_to_hbm [thread:$0]  (%p2018_p5), %s1363_s17, 128, %s1365_s20, %s1350_s21  }
 0xaee PF: > { %s2300_s14 = sld [smem:[#allocation18_spill]] }
 0xaef   : > { %s2301_s15 = sld [smem:[#allocation16_spill]] }
 0xaf4   : > { %p1573_p9 = scmp.ge.s32.totalorder %s2300_s14, 2 }
 0xaf5   : > { %s1376_s13 = sand.u32 1, %s2301_s15  }
 0xaf6   : > { %p1560_p10 = pnand %p1573_p9, %p2022_p6  ;;  %s1377_s3 = scalar_lea.sflag [#allocation4], %s1376_s13 }
 0xaf8   : > { %p1561_p11 = pneg %p1560_p10 }
 0xafa   : > { %1877 = dma.done.wait (%p1561_p11), %s1377_s3, 128  }
 0xafb   : > { %1879 = vsyncadd (%p1561_p11), %s1377_s3, 4294967168  ;;  %s2303_s20 = sld [smem:[#allocation19_spill]]  ;;  %s2306_s17 = smov %s1886_s18 }
 0xafc   : > { %s2304_s25 = sld [smem:[#allocation17_spill]] }
 0xafd   : > { %s2305_s19 = sld [smem:[#allocation20_spill]] }
 0xb01   : > { %p24_p12 = scmp.ge.s32.totalorder %s2303_s20, 4  }
 0xb02   : > { %s2307_s18 = smov %s2304_s25 }
 0xb03   :  { %26 = sbr.rel (!%p24_p12) target bundleno = 9 (0x9), region = 120 }
 0xb08   :  { %1383 = vsyncpa [#allocation3], 1 }
 0xb09   :  { %1385 = vsyncpa [#allocation3 + $0x1], 1 }
 0xb0a   :  { %1386 = vsyncpa [#allocation6], 1 }
 0xb0b   :  { %1387 = vsyncpa [#allocation9], 1 }
 0xb0c   :  { %1388 = vsyncpa [#allocation4], 1 }
 0xb0d   :  { %1390 = vsyncpa [#allocation4 + $0x1], 1 }

</bundles_post_ra>
